<compile_context>
chip_gen: v6e
topology: v6e:2x2x1
jax: 0.10.0
libtpu: 0.0.40
codegen_flags: <defaults>
</compile_context>

<pallas_src>
import functools

import numpy as np
import jax
import jax.numpy as jnp
from jax.experimental import pallas as pl
from jax.experimental.pallas import tpu as pltpu

BN_EPS = 1e-5


# ------------------------------------------------------------------ fused kernel

def _fused_cnn4_kernel(x_ref, *refs, n_batch, w0):
    """Entire CNN4 forward in one kernel invocation.

    x_ref : (N*W0, C0) f32, rows ordered (n, w); C0 is the zero-padded input channel dim.
    refs  : 4 x (sel, w_taps, gamma, beta)  +  (cls_w, cls_b)  +  o_ref
        sel    (3, N*W_out, N*W_in)  0/1 patch-selection matrices (one per kernel tap)
        w_taps (3, C_in, C_out)      middle-row conv-weight taps
        gamma  (1, C_out)            BN weight
        beta   (1, C_out)            BN bias
        cls_w  (hidden, output)      classifier weight (pre-transposed)
        cls_b  (1, output)           classifier bias
    o_ref : (N, output)
    """
    o_ref = refs[-1]
    wc_ref = refs[-3]
    bc_ref = refs[-2]
    blk_refs = refs[:-3]

    y = x_ref[...]                                     # (N*W0, C0) f32, VMEM resident
    w_in = w0
    for b in range(4):
        sel_ref, w_ref, g_ref, beta_ref = blk_refs[4 * b:4 * b + 4]
        w_out = (w_in - 1) // 2 + 1                    # conv 3x3, stride (1,2), pad 1, H == 1
        m_out = n_batch * w_out
        c_out = w_ref.shape[2]

        # Conv as 3 shifted matmuls.  Conv bias omitted: a per-channel constant is exactly
        # cancelled by the BN mean subtraction below (and it is initialised to zero anyway).
        acc = jnp.zeros((m_out, c_out), jnp.float32)
        for tap in range(3):
            gathered = jnp.dot(sel_ref[tap], y, preferred_element_type=jnp.float32)
            acc = acc + jnp.dot(gathered, w_ref[tap], preferred_element_type=jnp.float32)

        # BatchNorm2d (training semantics): one-pass batch stats over all (n, w) positions,
        # biased variance; then affine + ReLU.
        inv_m = 1.0 / float(m_out)
        mean = jnp.sum(acc, axis=0, keepdims=True) * inv_m
        ex2 = jnp.sum(acc * acc, axis=0, keepdims=True) * inv_m
        var = jnp.maximum(ex2 - mean * mean, 0.0)
        yn = (acc - mean) * jax.lax.rsqrt(var + BN_EPS)
        y = jnp.maximum(yn * g_ref[...] + beta_ref[...], 0.0)

        w_in = w_out

    # After block 4: w_in == 1, y is (N, hidden).  l2l Flatten of (N, C, 1, 1) is a no-op here.
    o_ref[...] = jnp.dot(y, wc_ref[...], preferred_element_type=jnp.float32) + bc_ref[...]


# ------------------------------------------------------------------ host-side helpers

def _full_spec(shape):
    return pl.BlockSpec(shape, lambda i: (0,) * len(shape))


def _select_taps(n_batch, w_in, w_out):
    """0/1 gather matrices: (sel[tap] @ x_rows)[n*w_out+w] == x_rows[n*w_in + 2*w + tap - 1]
    (zero row where 2*w + tap - 1 falls into the conv's zero padding)."""
    m_out, m_in = n_batch * w_out, n_batch * w_in
    sel = np.zeros((3, m_out, m_in), np.float32)
    for n in range(n_batch):
        for w in range(w_out):
            for tap in range(3):
                src = 2 * w + tap - 1
                if 0 <= src < w_in:
                    sel[tap, n * w_out + w, n * w_in + src] = 1.0
    return sel


def xavier_uniform(key, shape, fan_in, fan_out):
    bound = (6.0 / (fan_in + fan_out)) ** 0.5
    return jax.random.uniform(key, shape, jnp.float32, -bound, bound)


def init_params(key, hidden_size, output_size):
    params = {"blocks": []}
    in_c = 1
    for _ in range(4):
        key, k_w, k_g = jax.random.split(key, 3)
        # PyTorch conv weight (C_out, C_in, 3, 3), xavier_uniform gain=1.0.  The conv bias is
        # init.constant_(0) and is cancelled by BN's mean subtraction, so it is not stored.
        fan_in, fan_out = in_c * 9, hidden_size * 9
        w = xavier_uniform(k_w, (hidden_size, in_c, 3, 3), fan_in, fan_out)
        # H == 1 at runtime, so only the middle kernel row (kh = 1) ever touches real data.
        w_taps = jnp.transpose(w[:, :, 1, :], (2, 1, 0))          # (3, C_in, C_out)
        if in_c == 1:
            # pad the size-1 input-channel dim to one sublane tile (8); extra rows are zero,
            # matching the zero-padded extra input channels -> numerics unchanged.
            w_taps = jnp.pad(w_taps, ((0, 0), (0, 7), (0, 0)))
        params["blocks"].append({
            "w_taps": w_taps,
            "gamma": jax.random.uniform(k_g, (1, hidden_size), jnp.float32),  # init.uniform_
            "beta": jnp.zeros((1, hidden_size), jnp.float32),
        })
        in_c = hidden_size
    key, k_c = jax.random.split(key)
    w_cls = xavier_uniform(k_c, (output_size, hidden_size), hidden_size, output_size)
    params["cls_w"] = jnp.transpose(w_cls)                         # (hidden, output)
    params["cls_b"] = jnp.zeros((1, output_size), jnp.float32)
    return params


# ------------------------------------------------------------------ forward

@jax.jit
def cnn4_forward(x_nchw, params):
    N, c_in, H, W = x_nchw.shape
    assert c_in == 1 and H == 1, "CNN4_layer_by_layer with stride (1,2) expects (N, 1, 1, W) input"
    widths = [W]
    for _ in range(4):
        widths.append((widths[-1] - 1) // 2 + 1)
    assert widths[-1] == 1, "classifier expects exactly hidden_size features after Flatten"

    out_dim = params["cls_w"].shape[1]
    c0 = params["blocks"][0]["w_taps"].shape[1]

    # (N, 1, 1, W) -> (N*W, C0) rows ordered (n, w); pad the single channel up to C0 = 8.
    x_rows = x_nchw.reshape(N * W, 1).astype(jnp.float32)
    x_rows = jnp.pad(x_rows, ((0, 0), (0, c0 - 1)))

    inputs = [x_rows]
    for b, blk in enumerate(params["blocks"]):
        sel = jnp.asarray(_select_taps(N, widths[b], widths[b + 1]))
        inputs += [sel, blk["w_taps"], blk["gamma"], blk["beta"]]
    inputs += [params["cls_w"], params["cls_b"]]

    kernel = functools.partial(_fused_cnn4_kernel, n_batch=N, w0=W)
    return pl.pallas_call(
        kernel,
        grid=(1,),
        in_specs=[_full_spec(a.shape) for a in inputs],
        out_specs=_full_spec((N, out_dim)),
        out_shape=jax.ShapeDtypeStruct((N, out_dim), jnp.float32),
        compiler_params=pltpu.CompilerParams(dimension_semantics=("arbitrary",)),
    )(*inputs)


# ------------------------------------------------------------------ main

if __name__ == "__main__":
    hidden_size = 32
    output_size = 8
    batch = 2
    H, W = 1, 16  # stride (1,2) x 4 layers: W 16->8->4->2->1, Flatten -> hidden_size features

    key = jax.random.PRNGKey(0)
    kx, kp = jax.random.split(key)
    x = jax.random.normal(kx, (batch, 1, H, W), jnp.float32)   # NCHW like PyTorch
    params = init_params(kp, hidden_size, output_size)

    out = cnn4_forward(x, params)
    out = jax.block_until_ready(out)
    assert out.shape == (batch, output_size), out.shape
    print("KERNEL_OK")
</pallas_src>

<mosaic_0001>
module attributes {stable_mosaic.version = 11 : i64} {
  func.func @_fused_cnn4_kernel(%arg0: i32, %arg1: memref<32x8xf32, #tpu.memory_space<vmem>>, %arg2: memref<3x16x32xf32, #tpu.memory_space<vmem>>, %arg3: memref<3x8x32xf32, #tpu.memory_space<vmem>>, %arg4: memref<1x32xf32, #tpu.memory_space<vmem>>, %arg5: memref<1x32xf32, #tpu.memory_space<vmem>>, %arg6: memref<3x8x16xf32, #tpu.memory_space<vmem>>, %arg7: memref<3x32x32xf32, #tpu.memory_space<vmem>>, %arg8: memref<1x32xf32, #tpu.memory_space<vmem>>, %arg9: memref<1x32xf32, #tpu.memory_space<vmem>>, %arg10: memref<3x4x8xf32, #tpu.memory_space<vmem>>, %arg11: memref<3x32x32xf32, #tpu.memory_space<vmem>>, %arg12: memref<1x32xf32, #tpu.memory_space<vmem>>, %arg13: memref<1x32xf32, #tpu.memory_space<vmem>>, %arg14: memref<3x2x4xf32, #tpu.memory_space<vmem>>, %arg15: memref<3x32x32xf32, #tpu.memory_space<vmem>>, %arg16: memref<1x32xf32, #tpu.memory_space<vmem>>, %arg17: memref<1x32xf32, #tpu.memory_space<vmem>>, %arg18: memref<32x8xf32, #tpu.memory_space<vmem>>, %arg19: memref<1x8xf32, #tpu.memory_space<vmem>>, %arg20: memref<2x8xf32, #tpu.memory_space<vmem>>) attributes {dimension_semantics = [#tpu.dimension_semantics<arbitrary>], iteration_bounds = array<i64: 1>, scalar_prefetch = 0 : i64, scratch_operands = 0 : i64, tpu.core_type = #tpu.core_type<tc>, window_params = [{pipeline_mode = #tpu.pipeline_mode<synchronous>, transform_indices = @transform_0, window_bounds = array<i64: 32, 8>}, {pipeline_mode = #tpu.pipeline_mode<synchronous>, transform_indices = @transform_1, window_bounds = array<i64: 3, 16, 32>}, {pipeline_mode = #tpu.pipeline_mode<synchronous>, transform_indices = @transform_2, window_bounds = array<i64: 3, 8, 32>}, {pipeline_mode = #tpu.pipeline_mode<synchronous>, transform_indices = @transform_3, window_bounds = array<i64: 1, 32>}, {pipeline_mode = #tpu.pipeline_mode<synchronous>, transform_indices = @transform_4, window_bounds = array<i64: 1, 32>}, {pipeline_mode = #tpu.pipeline_mode<synchronous>, transform_indices = @transform_5, window_bounds = array<i64: 3, 8, 16>}, {pipeline_mode = #tpu.pipeline_mode<synchronous>, transform_indices = @transform_6, window_bounds = array<i64: 3, 32, 32>}, {pipeline_mode = #tpu.pipeline_mode<synchronous>, transform_indices = @transform_7, window_bounds = array<i64: 1, 32>}, {pipeline_mode = #tpu.pipeline_mode<synchronous>, transform_indices = @transform_8, window_bounds = array<i64: 1, 32>}, {pipeline_mode = #tpu.pipeline_mode<synchronous>, transform_indices = @transform_9, window_bounds = array<i64: 3, 4, 8>}, {pipeline_mode = #tpu.pipeline_mode<synchronous>, transform_indices = @transform_10, window_bounds = array<i64: 3, 32, 32>}, {pipeline_mode = #tpu.pipeline_mode<synchronous>, transform_indices = @transform_11, window_bounds = array<i64: 1, 32>}, {pipeline_mode = #tpu.pipeline_mode<synchronous>, transform_indices = @transform_12, window_bounds = array<i64: 1, 32>}, {pipeline_mode = #tpu.pipeline_mode<synchronous>, transform_indices = @transform_13, window_bounds = array<i64: 3, 2, 4>}, {pipeline_mode = #tpu.pipeline_mode<synchronous>, transform_indices = @transform_14, window_bounds = array<i64: 3, 32, 32>}, {pipeline_mode = #tpu.pipeline_mode<synchronous>, transform_indices = @transform_15, window_bounds = array<i64: 1, 32>}, {pipeline_mode = #tpu.pipeline_mode<synchronous>, transform_indices = @transform_16, window_bounds = array<i64: 1, 32>}, {pipeline_mode = #tpu.pipeline_mode<synchronous>, transform_indices = @transform_17, window_bounds = array<i64: 32, 8>}, {pipeline_mode = #tpu.pipeline_mode<synchronous>, transform_indices = @transform_18, window_bounds = array<i64: 1, 8>}, {pipeline_mode = #tpu.pipeline_mode<synchronous>, transform_indices = @transform_19, window_bounds = array<i64: 2, 8>}]} {
    %c0 = arith.constant 0 : index
    %c0_0 = arith.constant 0 : index
    %0 = vector.load %arg1[%c0, %c0_0] : memref<32x8xf32, #tpu.memory_space<vmem>>, vector<32x8xf32>
    %cst = arith.constant 0.000000e+00 : f32
    %1 = vector.broadcast %cst : f32 to vector<16x32xf32>
    %c0_1 = arith.constant 0 : index
    %c0_2 = arith.constant 0 : index
    %c0_3 = arith.constant 0 : index
    %2 = vector.load %arg2[%c0_1, %c0_2, %c0_3] : memref<3x16x32xf32, #tpu.memory_space<vmem>>, vector<1x16x32xf32>
    %3 = vector.shape_cast %2 : vector<1x16x32xf32> to vector<16x32xf32>
    %cst_4 = arith.constant dense<0.000000e+00> : vector<16x8xf32>
    %4 = tpu.matmul %3, %0, %cst_4 {dimension_numbers = #tpu.dot_dimension_numbers<[1], [0], [0], [1], [0, 0, 1, 1], [], []>} : vector<16x32xf32>, vector<32x8xf32>, vector<16x8xf32> -> vector<16x8xf32>
    %c0_5 = arith.constant 0 : index
    %c0_6 = arith.constant 0 : index
    %c0_7 = arith.constant 0 : index
    %5 = vector.load %arg3[%c0_5, %c0_6, %c0_7] : memref<3x8x32xf32, #tpu.memory_space<vmem>>, vector<1x8x32xf32>
    %6 = vector.shape_cast %5 : vector<1x8x32xf32> to vector<8x32xf32>
    %cst_8 = arith.constant dense<0.000000e+00> : vector<16x32xf32>
    %7 = tpu.matmul %4, %6, %cst_8 {dimension_numbers = #tpu.dot_dimension_numbers<[1], [0], [0], [1], [0, 0, 1, 1], [], []>} : vector<16x8xf32>, vector<8x32xf32>, vector<16x32xf32> -> vector<16x32xf32>
    %8 = arith.addf %1, %7 : vector<16x32xf32>
    %c1 = arith.constant 1 : index
    %c0_9 = arith.constant 0 : index
    %c0_10 = arith.constant 0 : index
    %9 = vector.load %arg2[%c1, %c0_9, %c0_10] : memref<3x16x32xf32, #tpu.memory_space<vmem>>, vector<1x16x32xf32>
    %10 = vector.shape_cast %9 : vector<1x16x32xf32> to vector<16x32xf32>
    %cst_11 = arith.constant dense<0.000000e+00> : vector<16x8xf32>
    %11 = tpu.matmul %10, %0, %cst_11 {dimension_numbers = #tpu.dot_dimension_numbers<[1], [0], [0], [1], [0, 0, 1, 1], [], []>} : vector<16x32xf32>, vector<32x8xf32>, vector<16x8xf32> -> vector<16x8xf32>
    %c1_12 = arith.constant 1 : index
    %c0_13 = arith.constant 0 : index
    %c0_14 = arith.constant 0 : index
    %12 = vector.load %arg3[%c1_12, %c0_13, %c0_14] : memref<3x8x32xf32, #tpu.memory_space<vmem>>, vector<1x8x32xf32>
    %13 = vector.shape_cast %12 : vector<1x8x32xf32> to vector<8x32xf32>
    %cst_15 = arith.constant dense<0.000000e+00> : vector<16x32xf32>
    %14 = tpu.matmul %11, %13, %cst_15 {dimension_numbers = #tpu.dot_dimension_numbers<[1], [0], [0], [1], [0, 0, 1, 1], [], []>} : vector<16x8xf32>, vector<8x32xf32>, vector<16x32xf32> -> vector<16x32xf32>
    %15 = arith.addf %8, %14 : vector<16x32xf32>
    %c2 = arith.constant 2 : index
    %c0_16 = arith.constant 0 : index
    %c0_17 = arith.constant 0 : index
    %16 = vector.load %arg2[%c2, %c0_16, %c0_17] : memref<3x16x32xf32, #tpu.memory_space<vmem>>, vector<1x16x32xf32>
    %17 = vector.shape_cast %16 : vector<1x16x32xf32> to vector<16x32xf32>
    %cst_18 = arith.constant dense<0.000000e+00> : vector<16x8xf32>
    %18 = tpu.matmul %17, %0, %cst_18 {dimension_numbers = #tpu.dot_dimension_numbers<[1], [0], [0], [1], [0, 0, 1, 1], [], []>} : vector<16x32xf32>, vector<32x8xf32>, vector<16x8xf32> -> vector<16x8xf32>
    %c2_19 = arith.constant 2 : index
    %c0_20 = arith.constant 0 : index
    %c0_21 = arith.constant 0 : index
    %19 = vector.load %arg3[%c2_19, %c0_20, %c0_21] : memref<3x8x32xf32, #tpu.memory_space<vmem>>, vector<1x8x32xf32>
    %20 = vector.shape_cast %19 : vector<1x8x32xf32> to vector<8x32xf32>
    %cst_22 = arith.constant dense<0.000000e+00> : vector<16x32xf32>
    %21 = tpu.matmul %18, %20, %cst_22 {dimension_numbers = #tpu.dot_dimension_numbers<[1], [0], [0], [1], [0, 0, 1, 1], [], []>} : vector<16x8xf32>, vector<8x32xf32>, vector<16x32xf32> -> vector<16x32xf32>
    %22 = arith.addf %15, %21 : vector<16x32xf32>
    %cst_23 = arith.constant dense<0.000000e+00> : vector<32xf32>
    %23 = vector.multi_reduction <add>, %22, %cst_23 [0] : vector<16x32xf32> to vector<32xf32>
    %24 = vector.shape_cast %23 : vector<32xf32> to vector<1x32xf32>
    %cst_24 = arith.constant 6.250000e-02 : f32
    %25 = vector.broadcast %cst_24 : f32 to vector<1x32xf32>
    %26 = arith.mulf %24, %25 : vector<1x32xf32>
    %27 = arith.mulf %22, %22 : vector<16x32xf32>
    %cst_25 = arith.constant dense<0.000000e+00> : vector<32xf32>
    %28 = vector.multi_reduction <add>, %27, %cst_25 [0] : vector<16x32xf32> to vector<32xf32>
    %29 = vector.shape_cast %28 : vector<32xf32> to vector<1x32xf32>
    %cst_26 = arith.constant 6.250000e-02 : f32
    %30 = vector.broadcast %cst_26 : f32 to vector<1x32xf32>
    %31 = arith.mulf %29, %30 : vector<1x32xf32>
    %32 = arith.mulf %26, %26 : vector<1x32xf32>
    %33 = arith.subf %31, %32 : vector<1x32xf32>
    %cst_27 = arith.constant 0.000000e+00 : f32
    %34 = vector.broadcast %cst_27 : f32 to vector<1x32xf32>
    %35 = arith.maximumf %33, %34 : vector<1x32xf32>
    %36 = vector.broadcast %26 : vector<1x32xf32> to vector<16x32xf32>
    %37 = arith.subf %22, %36 : vector<16x32xf32>
    %cst_28 = arith.constant 9.99999974E-6 : f32
    %38 = vector.broadcast %cst_28 : f32 to vector<1x32xf32>
    %39 = arith.addf %35, %38 : vector<1x32xf32>
    %40 = math.rsqrt %39 : vector<1x32xf32>
    %41 = vector.broadcast %40 : vector<1x32xf32> to vector<16x32xf32>
    %42 = arith.mulf %37, %41 : vector<16x32xf32>
    %c0_29 = arith.constant 0 : index
    %c0_30 = arith.constant 0 : index
    %43 = vector.load %arg4[%c0_29, %c0_30] : memref<1x32xf32, #tpu.memory_space<vmem>>, vector<1x32xf32>
    %44 = vector.broadcast %43 : vector<1x32xf32> to vector<16x32xf32>
    %45 = arith.mulf %42, %44 : vector<16x32xf32>
    %c0_31 = arith.constant 0 : index
    %c0_32 = arith.constant 0 : index
    %46 = vector.load %arg5[%c0_31, %c0_32] : memref<1x32xf32, #tpu.memory_space<vmem>>, vector<1x32xf32>
    %47 = vector.broadcast %46 : vector<1x32xf32> to vector<16x32xf32>
    %48 = arith.addf %45, %47 : vector<16x32xf32>
    %cst_33 = arith.constant 0.000000e+00 : f32
    %49 = vector.broadcast %cst_33 : f32 to vector<16x32xf32>
    %50 = arith.maximumf %48, %49 : vector<16x32xf32>
    %cst_34 = arith.constant 0.000000e+00 : f32
    %51 = vector.broadcast %cst_34 : f32 to vector<8x32xf32>
    %c0_35 = arith.constant 0 : index
    %c0_36 = arith.constant 0 : index
    %c0_37 = arith.constant 0 : index
    %52 = vector.load %arg6[%c0_35, %c0_36, %c0_37] : memref<3x8x16xf32, #tpu.memory_space<vmem>>, vector<1x8x16xf32>
    %53 = vector.shape_cast %52 : vector<1x8x16xf32> to vector<8x16xf32>
    %cst_38 = arith.constant dense<0.000000e+00> : vector<8x32xf32>
    %54 = tpu.matmul %53, %50, %cst_38 {dimension_numbers = #tpu.dot_dimension_numbers<[1], [0], [0], [1], [0, 0, 1, 1], [], []>} : vector<8x16xf32>, vector<16x32xf32>, vector<8x32xf32> -> vector<8x32xf32>
    %c0_39 = arith.constant 0 : index
    %c0_40 = arith.constant 0 : index
    %c0_41 = arith.constant 0 : index
    %55 = vector.load %arg7[%c0_39, %c0_40, %c0_41] : memref<3x32x32xf32, #tpu.memory_space<vmem>>, vector<1x32x32xf32>
    %56 = vector.shape_cast %55 : vector<1x32x32xf32> to vector<32x32xf32>
    %cst_42 = arith.constant dense<0.000000e+00> : vector<8x32xf32>
    %57 = tpu.matmul %54, %56, %cst_42 {dimension_numbers = #tpu.dot_dimension_numbers<[1], [0], [0], [1], [0, 0, 1, 1], [], []>} : vector<8x32xf32>, vector<32x32xf32>, vector<8x32xf32> -> vector<8x32xf32>
    %58 = arith.addf %51, %57 : vector<8x32xf32>
    %c1_43 = arith.constant 1 : index
    %c0_44 = arith.constant 0 : index
    %c0_45 = arith.constant 0 : index
    %59 = vector.load %arg6[%c1_43, %c0_44, %c0_45] : memref<3x8x16xf32, #tpu.memory_space<vmem>>, vector<1x8x16xf32>
    %60 = vector.shape_cast %59 : vector<1x8x16xf32> to vector<8x16xf32>
    %cst_46 = arith.constant dense<0.000000e+00> : vector<8x32xf32>
    %61 = tpu.matmul %60, %50, %cst_46 {dimension_numbers = #tpu.dot_dimension_numbers<[1], [0], [0], [1], [0, 0, 1, 1], [], []>} : vector<8x16xf32>, vector<16x32xf32>, vector<8x32xf32> -> vector<8x32xf32>
    %c1_47 = arith.constant 1 : index
    %c0_48 = arith.constant 0 : index
    %c0_49 = arith.constant 0 : index
    %62 = vector.load %arg7[%c1_47, %c0_48, %c0_49] : memref<3x32x32xf32, #tpu.memory_space<vmem>>, vector<1x32x32xf32>
    %63 = vector.shape_cast %62 : vector<1x32x32xf32> to vector<32x32xf32>
    %cst_50 = arith.constant dense<0.000000e+00> : vector<8x32xf32>
    %64 = tpu.matmul %61, %63, %cst_50 {dimension_numbers = #tpu.dot_dimension_numbers<[1], [0], [0], [1], [0, 0, 1, 1], [], []>} : vector<8x32xf32>, vector<32x32xf32>, vector<8x32xf32> -> vector<8x32xf32>
    %65 = arith.addf %58, %64 : vector<8x32xf32>
    %c2_51 = arith.constant 2 : index
    %c0_52 = arith.constant 0 : index
    %c0_53 = arith.constant 0 : index
    %66 = vector.load %arg6[%c2_51, %c0_52, %c0_53] : memref<3x8x16xf32, #tpu.memory_space<vmem>>, vector<1x8x16xf32>
    %67 = vector.shape_cast %66 : vector<1x8x16xf32> to vector<8x16xf32>
    %cst_54 = arith.constant dense<0.000000e+00> : vector<8x32xf32>
    %68 = tpu.matmul %67, %50, %cst_54 {dimension_numbers = #tpu.dot_dimension_numbers<[1], [0], [0], [1], [0, 0, 1, 1], [], []>} : vector<8x16xf32>, vector<16x32xf32>, vector<8x32xf32> -> vector<8x32xf32>
    %c2_55 = arith.constant 2 : index
    %c0_56 = arith.constant 0 : index
    %c0_57 = arith.constant 0 : index
    %69 = vector.load %arg7[%c2_55, %c0_56, %c0_57] : memref<3x32x32xf32, #tpu.memory_space<vmem>>, vector<1x32x32xf32>
    %70 = vector.shape_cast %69 : vector<1x32x32xf32> to vector<32x32xf32>
    %cst_58 = arith.constant dense<0.000000e+00> : vector<8x32xf32>
    %71 = tpu.matmul %68, %70, %cst_58 {dimension_numbers = #tpu.dot_dimension_numbers<[1], [0], [0], [1], [0, 0, 1, 1], [], []>} : vector<8x32xf32>, vector<32x32xf32>, vector<8x32xf32> -> vector<8x32xf32>
    %72 = arith.addf %65, %71 : vector<8x32xf32>
    %cst_59 = arith.constant dense<0.000000e+00> : vector<32xf32>
    %73 = vector.multi_reduction <add>, %72, %cst_59 [0] : vector<8x32xf32> to vector<32xf32>
    %74 = vector.shape_cast %73 : vector<32xf32> to vector<1x32xf32>
    %cst_60 = arith.constant 1.250000e-01 : f32
    %75 = vector.broadcast %cst_60 : f32 to vector<1x32xf32>
    %76 = arith.mulf %74, %75 : vector<1x32xf32>
    %77 = arith.mulf %72, %72 : vector<8x32xf32>
    %cst_61 = arith.constant dense<0.000000e+00> : vector<32xf32>
    %78 = vector.multi_reduction <add>, %77, %cst_61 [0] : vector<8x32xf32> to vector<32xf32>
    %79 = vector.shape_cast %78 : vector<32xf32> to vector<1x32xf32>
    %cst_62 = arith.constant 1.250000e-01 : f32
    %80 = vector.broadcast %cst_62 : f32 to vector<1x32xf32>
    %81 = arith.mulf %79, %80 : vector<1x32xf32>
    %82 = arith.mulf %76, %76 : vector<1x32xf32>
    %83 = arith.subf %81, %82 : vector<1x32xf32>
    %cst_63 = arith.constant 0.000000e+00 : f32
    %84 = vector.broadcast %cst_63 : f32 to vector<1x32xf32>
    %85 = arith.maximumf %83, %84 : vector<1x32xf32>
    %86 = vector.broadcast %76 : vector<1x32xf32> to vector<8x32xf32>
    %87 = arith.subf %72, %86 : vector<8x32xf32>
    %cst_64 = arith.constant 9.99999974E-6 : f32
    %88 = vector.broadcast %cst_64 : f32 to vector<1x32xf32>
    %89 = arith.addf %85, %88 : vector<1x32xf32>
    %90 = math.rsqrt %89 : vector<1x32xf32>
    %91 = vector.broadcast %90 : vector<1x32xf32> to vector<8x32xf32>
    %92 = arith.mulf %87, %91 : vector<8x32xf32>
    %c0_65 = arith.constant 0 : index
    %c0_66 = arith.constant 0 : index
    %93 = vector.load %arg8[%c0_65, %c0_66] : memref<1x32xf32, #tpu.memory_space<vmem>>, vector<1x32xf32>
    %94 = vector.broadcast %93 : vector<1x32xf32> to vector<8x32xf32>
    %95 = arith.mulf %92, %94 : vector<8x32xf32>
    %c0_67 = arith.constant 0 : index
    %c0_68 = arith.constant 0 : index
    %96 = vector.load %arg9[%c0_67, %c0_68] : memref<1x32xf32, #tpu.memory_space<vmem>>, vector<1x32xf32>
    %97 = vector.broadcast %96 : vector<1x32xf32> to vector<8x32xf32>
    %98 = arith.addf %95, %97 : vector<8x32xf32>
    %cst_69 = arith.constant 0.000000e+00 : f32
    %99 = vector.broadcast %cst_69 : f32 to vector<8x32xf32>
    %100 = arith.maximumf %98, %99 : vector<8x32xf32>
    %cst_70 = arith.constant 0.000000e+00 : f32
    %101 = vector.broadcast %cst_70 : f32 to vector<4x32xf32>
    %c0_71 = arith.constant 0 : index
    %c0_72 = arith.constant 0 : index
    %c0_73 = arith.constant 0 : index
    %102 = vector.load %arg10[%c0_71, %c0_72, %c0_73] : memref<3x4x8xf32, #tpu.memory_space<vmem>>, vector<1x4x8xf32>
    %103 = vector.shape_cast %102 : vector<1x4x8xf32> to vector<4x8xf32>
    %cst_74 = arith.constant dense<0.000000e+00> : vector<4x32xf32>
    %104 = tpu.matmul %103, %100, %cst_74 {dimension_numbers = #tpu.dot_dimension_numbers<[1], [0], [0], [1], [0, 0, 1, 1], [], []>} : vector<4x8xf32>, vector<8x32xf32>, vector<4x32xf32> -> vector<4x32xf32>
    %c0_75 = arith.constant 0 : index
    %c0_76 = arith.constant 0 : index
    %c0_77 = arith.constant 0 : index
    %105 = vector.load %arg11[%c0_75, %c0_76, %c0_77] : memref<3x32x32xf32, #tpu.memory_space<vmem>>, vector<1x32x32xf32>
    %106 = vector.shape_cast %105 : vector<1x32x32xf32> to vector<32x32xf32>
    %cst_78 = arith.constant dense<0.000000e+00> : vector<4x32xf32>
    %107 = tpu.matmul %104, %106, %cst_78 {dimension_numbers = #tpu.dot_dimension_numbers<[1], [0], [0], [1], [0, 0, 1, 1], [], []>} : vector<4x32xf32>, vector<32x32xf32>, vector<4x32xf32> -> vector<4x32xf32>
    %108 = arith.addf %101, %107 : vector<4x32xf32>
    %c1_79 = arith.constant 1 : index
    %c0_80 = arith.constant 0 : index
    %c0_81 = arith.constant 0 : index
    %109 = vector.load %arg10[%c1_79, %c0_80, %c0_81] : memref<3x4x8xf32, #tpu.memory_space<vmem>>, vector<1x4x8xf32>
    %110 = vector.shape_cast %109 : vector<1x4x8xf32> to vector<4x8xf32>
    %cst_82 = arith.constant dense<0.000000e+00> : vector<4x32xf32>
    %111 = tpu.matmul %110, %100, %cst_82 {dimension_numbers = #tpu.dot_dimension_numbers<[1], [0], [0], [1], [0, 0, 1, 1], [], []>} : vector<4x8xf32>, vector<8x32xf32>, vector<4x32xf32> -> vector<4x32xf32>
    %c1_83 = arith.constant 1 : index
    %c0_84 = arith.constant 0 : index
    %c0_85 = arith.constant 0 : index
    %112 = vector.load %arg11[%c1_83, %c0_84, %c0_85] : memref<3x32x32xf32, #tpu.memory_space<vmem>>, vector<1x32x32xf32>
    %113 = vector.shape_cast %112 : vector<1x32x32xf32> to vector<32x32xf32>
    %cst_86 = arith.constant dense<0.000000e+00> : vector<4x32xf32>
    %114 = tpu.matmul %111, %113, %cst_86 {dimension_numbers = #tpu.dot_dimension_numbers<[1], [0], [0], [1], [0, 0, 1, 1], [], []>} : vector<4x32xf32>, vector<32x32xf32>, vector<4x32xf32> -> vector<4x32xf32>
    %115 = arith.addf %108, %114 : vector<4x32xf32>
    %c2_87 = arith.constant 2 : index
    %c0_88 = arith.constant 0 : index
    %c0_89 = arith.constant 0 : index
    %116 = vector.load %arg10[%c2_87, %c0_88, %c0_89] : memref<3x4x8xf32, #tpu.memory_space<vmem>>, vector<1x4x8xf32>
    %117 = vector.shape_cast %116 : vector<1x4x8xf32> to vector<4x8xf32>
    %cst_90 = arith.constant dense<0.000000e+00> : vector<4x32xf32>
    %118 = tpu.matmul %117, %100, %cst_90 {dimension_numbers = #tpu.dot_dimension_numbers<[1], [0], [0], [1], [0, 0, 1, 1], [], []>} : vector<4x8xf32>, vector<8x32xf32>, vector<4x32xf32> -> vector<4x32xf32>
    %c2_91 = arith.constant 2 : index
    %c0_92 = arith.constant 0 : index
    %c0_93 = arith.constant 0 : index
    %119 = vector.load %arg11[%c2_91, %c0_92, %c0_93] : memref<3x32x32xf32, #tpu.memory_space<vmem>>, vector<1x32x32xf32>
    %120 = vector.shape_cast %119 : vector<1x32x32xf32> to vector<32x32xf32>
    %cst_94 = arith.constant dense<0.000000e+00> : vector<4x32xf32>
    %121 = tpu.matmul %118, %120, %cst_94 {dimension_numbers = #tpu.dot_dimension_numbers<[1], [0], [0], [1], [0, 0, 1, 1], [], []>} : vector<4x32xf32>, vector<32x32xf32>, vector<4x32xf32> -> vector<4x32xf32>
    %122 = arith.addf %115, %121 : vector<4x32xf32>
    %cst_95 = arith.constant dense<0.000000e+00> : vector<32xf32>
    %123 = vector.multi_reduction <add>, %122, %cst_95 [0] : vector<4x32xf32> to vector<32xf32>
    %124 = vector.shape_cast %123 : vector<32xf32> to vector<1x32xf32>
    %cst_96 = arith.constant 2.500000e-01 : f32
    %125 = vector.broadcast %cst_96 : f32 to vector<1x32xf32>
    %126 = arith.mulf %124, %125 : vector<1x32xf32>
    %127 = arith.mulf %122, %122 : vector<4x32xf32>
    %cst_97 = arith.constant dense<0.000000e+00> : vector<32xf32>
    %128 = vector.multi_reduction <add>, %127, %cst_97 [0] : vector<4x32xf32> to vector<32xf32>
    %129 = vector.shape_cast %128 : vector<32xf32> to vector<1x32xf32>
    %cst_98 = arith.constant 2.500000e-01 : f32
    %130 = vector.broadcast %cst_98 : f32 to vector<1x32xf32>
    %131 = arith.mulf %129, %130 : vector<1x32xf32>
    %132 = arith.mulf %126, %126 : vector<1x32xf32>
    %133 = arith.subf %131, %132 : vector<1x32xf32>
    %cst_99 = arith.constant 0.000000e+00 : f32
    %134 = vector.broadcast %cst_99 : f32 to vector<1x32xf32>
    %135 = arith.maximumf %133, %134 : vector<1x32xf32>
    %136 = vector.broadcast %126 : vector<1x32xf32> to vector<4x32xf32>
    %137 = arith.subf %122, %136 : vector<4x32xf32>
    %cst_100 = arith.constant 9.99999974E-6 : f32
    %138 = vector.broadcast %cst_100 : f32 to vector<1x32xf32>
    %139 = arith.addf %135, %138 : vector<1x32xf32>
    %140 = math.rsqrt %139 : vector<1x32xf32>
    %141 = vector.broadcast %140 : vector<1x32xf32> to vector<4x32xf32>
    %142 = arith.mulf %137, %141 : vector<4x32xf32>
    %c0_101 = arith.constant 0 : index
    %c0_102 = arith.constant 0 : index
    %143 = vector.load %arg12[%c0_101, %c0_102] : memref<1x32xf32, #tpu.memory_space<vmem>>, vector<1x32xf32>
    %144 = vector.broadcast %143 : vector<1x32xf32> to vector<4x32xf32>
    %145 = arith.mulf %142, %144 : vector<4x32xf32>
    %c0_103 = arith.constant 0 : index
    %c0_104 = arith.constant 0 : index
    %146 = vector.load %arg13[%c0_103, %c0_104] : memref<1x32xf32, #tpu.memory_space<vmem>>, vector<1x32xf32>
    %147 = vector.broadcast %146 : vector<1x32xf32> to vector<4x32xf32>
    %148 = arith.addf %145, %147 : vector<4x32xf32>
    %cst_105 = arith.constant 0.000000e+00 : f32
    %149 = vector.broadcast %cst_105 : f32 to vector<4x32xf32>
    %150 = arith.maximumf %148, %149 : vector<4x32xf32>
    %cst_106 = arith.constant 0.000000e+00 : f32
    %151 = vector.broadcast %cst_106 : f32 to vector<2x32xf32>
    %c0_107 = arith.constant 0 : index
    %c0_108 = arith.constant 0 : index
    %c0_109 = arith.constant 0 : index
    %152 = vector.load %arg14[%c0_107, %c0_108, %c0_109] : memref<3x2x4xf32, #tpu.memory_space<vmem>>, vector<1x2x4xf32>
    %153 = vector.shape_cast %152 : vector<1x2x4xf32> to vector<2x4xf32>
    %cst_110 = arith.constant dense<0.000000e+00> : vector<2x32xf32>
    %154 = tpu.matmul %153, %150, %cst_110 {dimension_numbers = #tpu.dot_dimension_numbers<[1], [0], [0], [1], [0, 0, 1, 1], [], []>} : vector<2x4xf32>, vector<4x32xf32>, vector<2x32xf32> -> vector<2x32xf32>
    %c0_111 = arith.constant 0 : index
    %c0_112 = arith.constant 0 : index
    %c0_113 = arith.constant 0 : index
    %155 = vector.load %arg15[%c0_111, %c0_112, %c0_113] : memref<3x32x32xf32, #tpu.memory_space<vmem>>, vector<1x32x32xf32>
    %156 = vector.shape_cast %155 : vector<1x32x32xf32> to vector<32x32xf32>
    %cst_114 = arith.constant dense<0.000000e+00> : vector<2x32xf32>
    %157 = tpu.matmul %154, %156, %cst_114 {dimension_numbers = #tpu.dot_dimension_numbers<[1], [0], [0], [1], [0, 0, 1, 1], [], []>} : vector<2x32xf32>, vector<32x32xf32>, vector<2x32xf32> -> vector<2x32xf32>
    %158 = arith.addf %151, %157 : vector<2x32xf32>
    %c1_115 = arith.constant 1 : index
    %c0_116 = arith.constant 0 : index
    %c0_117 = arith.constant 0 : index
    %159 = vector.load %arg14[%c1_115, %c0_116, %c0_117] : memref<3x2x4xf32, #tpu.memory_space<vmem>>, vector<1x2x4xf32>
    %160 = vector.shape_cast %159 : vector<1x2x4xf32> to vector<2x4xf32>
    %cst_118 = arith.constant dense<0.000000e+00> : vector<2x32xf32>
    %161 = tpu.matmul %160, %150, %cst_118 {dimension_numbers = #tpu.dot_dimension_numbers<[1], [0], [0], [1], [0, 0, 1, 1], [], []>} : vector<2x4xf32>, vector<4x32xf32>, vector<2x32xf32> -> vector<2x32xf32>
    %c1_119 = arith.constant 1 : index
    %c0_120 = arith.constant 0 : index
    %c0_121 = arith.constant 0 : index
    %162 = vector.load %arg15[%c1_119, %c0_120, %c0_121] : memref<3x32x32xf32, #tpu.memory_space<vmem>>, vector<1x32x32xf32>
    %163 = vector.shape_cast %162 : vector<1x32x32xf32> to vector<32x32xf32>
    %cst_122 = arith.constant dense<0.000000e+00> : vector<2x32xf32>
    %164 = tpu.matmul %161, %163, %cst_122 {dimension_numbers = #tpu.dot_dimension_numbers<[1], [0], [0], [1], [0, 0, 1, 1], [], []>} : vector<2x32xf32>, vector<32x32xf32>, vector<2x32xf32> -> vector<2x32xf32>
    %165 = arith.addf %158, %164 : vector<2x32xf32>
    %c2_123 = arith.constant 2 : index
    %c0_124 = arith.constant 0 : index
    %c0_125 = arith.constant 0 : index
    %166 = vector.load %arg14[%c2_123, %c0_124, %c0_125] : memref<3x2x4xf32, #tpu.memory_space<vmem>>, vector<1x2x4xf32>
    %167 = vector.shape_cast %166 : vector<1x2x4xf32> to vector<2x4xf32>
    %cst_126 = arith.constant dense<0.000000e+00> : vector<2x32xf32>
    %168 = tpu.matmul %167, %150, %cst_126 {dimension_numbers = #tpu.dot_dimension_numbers<[1], [0], [0], [1], [0, 0, 1, 1], [], []>} : vector<2x4xf32>, vector<4x32xf32>, vector<2x32xf32> -> vector<2x32xf32>
    %c2_127 = arith.constant 2 : index
    %c0_128 = arith.constant 0 : index
    %c0_129 = arith.constant 0 : index
    %169 = vector.load %arg15[%c2_127, %c0_128, %c0_129] : memref<3x32x32xf32, #tpu.memory_space<vmem>>, vector<1x32x32xf32>
    %170 = vector.shape_cast %169 : vector<1x32x32xf32> to vector<32x32xf32>
    %cst_130 = arith.constant dense<0.000000e+00> : vector<2x32xf32>
    %171 = tpu.matmul %168, %170, %cst_130 {dimension_numbers = #tpu.dot_dimension_numbers<[1], [0], [0], [1], [0, 0, 1, 1], [], []>} : vector<2x32xf32>, vector<32x32xf32>, vector<2x32xf32> -> vector<2x32xf32>
    %172 = arith.addf %165, %171 : vector<2x32xf32>
    %cst_131 = arith.constant dense<0.000000e+00> : vector<32xf32>
    %173 = vector.multi_reduction <add>, %172, %cst_131 [0] : vector<2x32xf32> to vector<32xf32>
    %174 = vector.shape_cast %173 : vector<32xf32> to vector<1x32xf32>
    %cst_132 = arith.constant 5.000000e-01 : f32
    %175 = vector.broadcast %cst_132 : f32 to vector<1x32xf32>
    %176 = arith.mulf %174, %175 : vector<1x32xf32>
    %177 = arith.mulf %172, %172 : vector<2x32xf32>
    %cst_133 = arith.constant dense<0.000000e+00> : vector<32xf32>
    %178 = vector.multi_reduction <add>, %177, %cst_133 [0] : vector<2x32xf32> to vector<32xf32>
    %179 = vector.shape_cast %178 : vector<32xf32> to vector<1x32xf32>
    %cst_134 = arith.constant 5.000000e-01 : f32
    %180 = vector.broadcast %cst_134 : f32 to vector<1x32xf32>
    %181 = arith.mulf %179, %180 : vector<1x32xf32>
    %182 = arith.mulf %176, %176 : vector<1x32xf32>
    %183 = arith.subf %181, %182 : vector<1x32xf32>
    %cst_135 = arith.constant 0.000000e+00 : f32
    %184 = vector.broadcast %cst_135 : f32 to vector<1x32xf32>
    %185 = arith.maximumf %183, %184 : vector<1x32xf32>
    %186 = vector.broadcast %176 : vector<1x32xf32> to vector<2x32xf32>
    %187 = arith.subf %172, %186 : vector<2x32xf32>
    %cst_136 = arith.constant 9.99999974E-6 : f32
    %188 = vector.broadcast %cst_136 : f32 to vector<1x32xf32>
    %189 = arith.addf %185, %188 : vector<1x32xf32>
    %190 = math.rsqrt %189 : vector<1x32xf32>
    %191 = vector.broadcast %190 : vector<1x32xf32> to vector<2x32xf32>
    %192 = arith.mulf %187, %191 : vector<2x32xf32>
    %c0_137 = arith.constant 0 : index
    %c0_138 = arith.constant 0 : index
    %193 = vector.load %arg16[%c0_137, %c0_138] : memref<1x32xf32, #tpu.memory_space<vmem>>, vector<1x32xf32>
    %194 = vector.broadcast %193 : vector<1x32xf32> to vector<2x32xf32>
    %195 = arith.mulf %192, %194 : vector<2x32xf32>
    %c0_139 = arith.constant 0 : index
    %c0_140 = arith.constant 0 : index
    %196 = vector.load %arg17[%c0_139, %c0_140] : memref<1x32xf32, #tpu.memory_space<vmem>>, vector<1x32xf32>
    %197 = vector.broadcast %196 : vector<1x32xf32> to vector<2x32xf32>
    %198 = arith.addf %195, %197 : vector<2x32xf32>
    %cst_141 = arith.constant 0.000000e+00 : f32
    %199 = vector.broadcast %cst_141 : f32 to vector<2x32xf32>
    %200 = arith.maximumf %198, %199 : vector<2x32xf32>
    %c0_142 = arith.constant 0 : index
    %c0_143 = arith.constant 0 : index
    %201 = vector.load %arg18[%c0_142, %c0_143] : memref<32x8xf32, #tpu.memory_space<vmem>>, vector<32x8xf32>
    %cst_144 = arith.constant dense<0.000000e+00> : vector<2x8xf32>
    %202 = tpu.matmul %200, %201, %cst_144 {dimension_numbers = #tpu.dot_dimension_numbers<[1], [0], [0], [1], [0, 0, 1, 1], [], []>} : vector<2x32xf32>, vector<32x8xf32>, vector<2x8xf32> -> vector<2x8xf32>
    %c0_145 = arith.constant 0 : index
    %c0_146 = arith.constant 0 : index
    %203 = vector.load %arg19[%c0_145, %c0_146] : memref<1x8xf32, #tpu.memory_space<vmem>>, vector<1x8xf32>
    %204 = vector.broadcast %203 : vector<1x8xf32> to vector<2x8xf32>
    %205 = arith.addf %202, %204 : vector<2x8xf32>
    %c0_147 = arith.constant 0 : index
    %c0_148 = arith.constant 0 : index
    %206 = vector.load %arg20[%c0_147, %c0_148] : memref<2x8xf32, #tpu.memory_space<vmem>>, vector<2x8xf32>
    tpu.vector_store %arg20[%c0_147, %c0_148], %205 {strides = array<i32>} : memref<2x8xf32, #tpu.memory_space<vmem>>, vector<2x8xf32>,
    return
  }
  func.func @transform_0(%arg0: i32) -> (i32, i32) {
    %c0_i32 = arith.constant 0 : i32
    %c0_i32_0 = arith.constant 0 : i32
    %c0_i32_1 = arith.constant 0 : i32
    return %c0_i32, %c0_i32_0 : i32, i32
  }
  func.func @transform_1(%arg0: i32) -> (i32, i32, i32) {
    %c0_i32 = arith.constant 0 : i32
    %c0_i32_0 = arith.constant 0 : i32
    %c0_i32_1 = arith.constant 0 : i32
    %c0_i32_2 = arith.constant 0 : i32
    return %c0_i32, %c0_i32_0, %c0_i32_1 : i32, i32, i32
  }
  func.func @transform_2(%arg0: i32) -> (i32, i32, i32) {
    %c0_i32 = arith.constant 0 : i32
    %c0_i32_0 = arith.constant 0 : i32
    %c0_i32_1 = arith.constant 0 : i32
    %c0_i32_2 = arith.constant 0 : i32
    return %c0_i32, %c0_i32_0, %c0_i32_1 : i32, i32, i32
  }
  func.func @transform_3(%arg0: i32) -> (i32, i32) {
    %c0_i32 = arith.constant 0 : i32
    %c0_i32_0 = arith.constant 0 : i32
    %c0_i32_1 = arith.constant 0 : i32
    return %c0_i32, %c0_i32_0 : i32, i32
  }
  func.func @transform_4(%arg0: i32) -> (i32, i32) {
    %c0_i32 = arith.constant 0 : i32
    %c0_i32_0 = arith.constant 0 : i32
    %c0_i32_1 = arith.constant 0 : i32
    return %c0_i32, %c0_i32_0 : i32, i32
  }
  func.func @transform_5(%arg0: i32) -> (i32, i32, i32) {
    %c0_i32 = arith.constant 0 : i32
    %c0_i32_0 = arith.constant 0 : i32
    %c0_i32_1 = arith.constant 0 : i32
    %c0_i32_2 = arith.constant 0 : i32
    return %c0_i32, %c0_i32_0, %c0_i32_1 : i32, i32, i32
  }
  func.func @transform_6(%arg0: i32) -> (i32, i32, i32) {
    %c0_i32 = arith.constant 0 : i32
    %c0_i32_0 = arith.constant 0 : i32
    %c0_i32_1 = arith.constant 0 : i32
    %c0_i32_2 = arith.constant 0 : i32
    return %c0_i32, %c0_i32_0, %c0_i32_1 : i32, i32, i32
  }
  func.func @transform_7(%arg0: i32) -> (i32, i32) {
    %c0_i32 = arith.constant 0 : i32
    %c0_i32_0 = arith.constant 0 : i32
    %c0_i32_1 = arith.constant 0 : i32
    return %c0_i32, %c0_i32_0 : i32, i32
  }
  func.func @transform_8(%arg0: i32) -> (i32, i32) {
    %c0_i32 = arith.constant 0 : i32
    %c0_i32_0 = arith.constant 0 : i32
    %c0_i32_1 = arith.constant 0 : i32
    return %c0_i32, %c0_i32_0 : i32, i32
  }
  func.func @transform_9(%arg0: i32) -> (i32, i32, i32) {
    %c0_i32 = arith.constant 0 : i32
    %c0_i32_0 = arith.constant 0 : i32
    %c0_i32_1 = arith.constant 0 : i32
    %c0_i32_2 = arith.constant 0 : i32
    return %c0_i32, %c0_i32_0, %c0_i32_1 : i32, i32, i32
  }
  func.func @transform_10(%arg0: i32) -> (i32, i32, i32) {
    %c0_i32 = arith.constant 0 : i32
    %c0_i32_0 = arith.constant 0 : i32
    %c0_i32_1 = arith.constant 0 : i32
    %c0_i32_2 = arith.constant 0 : i32
    return %c0_i32, %c0_i32_0, %c0_i32_1 : i32, i32, i32
  }
  func.func @transform_11(%arg0: i32) -> (i32, i32) {
    %c0_i32 = arith.constant 0 : i32
    %c0_i32_0 = arith.constant 0 : i32
    %c0_i32_1 = arith.constant 0 : i32
    return %c0_i32, %c0_i32_0 : i32, i32
  }
  func.func @transform_12(%arg0: i32) -> (i32, i32) {
    %c0_i32 = arith.constant 0 : i32
    %c0_i32_0 = arith.constant 0 : i32
    %c0_i32_1 = arith.constant 0 : i32
    return %c0_i32, %c0_i32_0 : i32, i32
  }
  func.func @transform_13(%arg0: i32) -> (i32, i32, i32) {
    %c0_i32 = arith.constant 0 : i32
    %c0_i32_0 = arith.constant 0 : i32
    %c0_i32_1 = arith.constant 0 : i32
    %c0_i32_2 = arith.constant 0 : i32
    return %c0_i32, %c0_i32_0, %c0_i32_1 : i32, i32, i32
  }
  func.func @transform_14(%arg0: i32) -> (i32, i32, i32) {
    %c0_i32 = arith.constant 0 : i32
    %c0_i32_0 = arith.constant 0 : i32
    %c0_i32_1 = arith.constant 0 : i32
    %c0_i32_2 = arith.constant 0 : i32
    return %c0_i32, %c0_i32_0, %c0_i32_1 : i32, i32, i32
  }
  func.func @transform_15(%arg0: i32) -> (i32, i32) {
    %c0_i32 = arith.constant 0 : i32
    %c0_i32_0 = arith.constant 0 : i32
    %c0_i32_1 = arith.constant 0 : i32
    return %c0_i32, %c0_i32_0 : i32, i32
  }
  func.func @transform_16(%arg0: i32) -> (i32, i32) {
    %c0_i32 = arith.constant 0 : i32
    %c0_i32_0 = arith.constant 0 : i32
    %c0_i32_1 = arith.constant 0 : i32
    return %c0_i32, %c0_i32_0 : i32, i32
  }
  func.func @transform_17(%arg0: i32) -> (i32, i32) {
    %c0_i32 = arith.constant 0 : i32
    %c0_i32_0 = arith.constant 0 : i32
    %c0_i32_1 = arith.constant 0 : i32
    return %c0_i32, %c0_i32_0 : i32, i32
  }
  func.func @transform_18(%arg0: i32) -> (i32, i32) {
    %c0_i32 = arith.constant 0 : i32
    %c0_i32_0 = arith.constant 0 : i32
    %c0_i32_1 = arith.constant 0 : i32
    return %c0_i32, %c0_i32_0 : i32, i32
  }
  func.func @transform_19(%arg0: i32) -> (i32, i32) {
    %c0_i32 = arith.constant 0 : i32
    %c0_i32_0 = arith.constant 0 : i32
    %c0_i32_1 = arith.constant 0 : i32
    return %c0_i32, %c0_i32_0 : i32, i32
  }
}

</mosaic_0001>

<bundles_post_ra>
// kernel: cnn4_forward.1
= control target key start
LH: loop header
LB: loop body
LE: loop exit
PB: predicated region body
PF: predicated region fallthrough
CT: control target
= control target key end

     0   :  { %s3445_s0 = inlined_call_operand.vmem [shape: f32[32,8], index: 0, kind: input, shape index: {}]   ;;  %s3446_s1 = inlined_call_operand.vmem [shape: f32[3,16,32], index: 1, kind: input, shape index: {}]   ;;  %s3447_s2 = inlined_call_operand.hbm [shape: f32[3,8,32], index: 2, kind: input, shape index: {}]   ;;  %s3448_s3 = inlined_call_operand.vmem [shape: f32[1,32], index: 3, kind: input, shape index: {}]   ;;  %s3449_s4 = inlined_call_operand.hbm [shape: f32[1,32], index: 4, kind: input, shape index: {}]   ;;  %s3450_s5 = inlined_call_operand.vmem [shape: f32[3,8,16], index: 5, kind: input, shape index: {}]   ;;  %s3451_s6 = inlined_call_operand.vmem [shape: f32[3,32,32], index: 6, kind: input, shape index: {}]   ;;  %s3452_s7 = inlined_call_operand.hbm [shape: f32[1,32], index: 7, kind: input, shape index: {}]   ;;  %s3453_s8 = inlined_call_operand.hbm [shape: f32[1,32], index: 8, kind: input, shape index: {}]   ;;  %s3454_s9 = inlined_call_operand.hbm [shape: f32[3,4,8], index: 9, kind: input, shape index: {}]   ;;  %s3455_s10 = inlined_call_operand.hbm [shape: f32[3,32,32], index: 10, kind: input, shape index: {}]   ;;  %s3456_s11 = inlined_call_operand.hbm [shape: f32[1,32], index: 11, kind: input, shape index: {}]   ;;  %s3457_s12 = inlined_call_operand.hbm [shape: f32[1,32], index: 12, kind: input, shape index: {}]   ;;  %s3458_s13 = inlined_call_operand.vmem [shape: f32[3,2,4], index: 13, kind: input, shape index: {}]   ;;  %s3459_s14 = inlined_call_operand.hbm [shape: f32[3,32,32], index: 14, kind: input, shape index: {}]   ;;  %s3460_s15 = inlined_call_operand.hbm [shape: f32[1,32], index: 15, kind: input, shape index: {}]   ;;  %s3461_s16 = inlined_call_operand.hbm [shape: f32[1,32], index: 16, kind: input, shape index: {}]   ;;  %s3462_s17 = inlined_call_operand.vmem [shape: f32[32,8], index: 17, kind: input, shape index: {}]   ;;  %s3463_s18 = inlined_call_operand.hbm [shape: f32[1,8], index: 18, kind: input, shape index: {}]   ;;  %s3464_s19 = inlined_call_operand.hbm [shape: f32[2,8], index: 19, kind: output, shape index: {}]  }
   0x1   :  { %3467 = sst [smem:[#allocation31_spill]] %s3445_s0 }
   0x2   :  { %3468 = sst [smem:[#allocation32_spill]] %s3446_s1 }
   0x3   :  { %3469 = sst [smem:[#allocation33_spill]] %s3447_s2 }
   0x4   :  { %3470 = sst [smem:[#allocation34_spill]] %s3448_s3 }
   0x5   :  { %24 = vsyncpa [#allocation3], 0 }
   0x6   :  { %25 = vsyncpa [#allocation6], 0 }
   0x7   :  { %26 = vsyncpa [#allocation9], 0 }
   0x8   :  { %27 = vsyncpa [#allocation12], 0 }
   0x9   :  { %28 = vsyncpa [#allocation15], 0 }
   0xa   :  { %29 = vsyncpa [#allocation18], 0 }
   0xb   :  { %30 = vsyncpa [#allocation21], 0 }
   0xc   :  { %31 = vsyncpa [#allocation4], 0  ;;  %s3049_s0 = smov [#allocation5]   ;;  %s3050_s20 = smov [#allocation8]  }
   0xd   :  { %s56_s30 = sshll.u32 %s3049_s0, 4  ;;  %s80_s21 = sshll.u32 %s3050_s20, 4  ;;  %s57_s30 = int_to_ptr.vmem [resolvable:$true] %s56_s30  ;;  %s81_s21 = int_to_ptr.vmem [resolvable:$true] %s80_s21 }
   0xe   :  { %s2781_s1 = scalar_lea.vmem %s57_s30, 16  ;;  %s2785_s22 = scalar_lea.vmem %s57_s30, 32 }
   0xf   :  { %p2782_p0 = scmp.ne.s32.totalorder %s57_s30, %s2781_s1  ;;  %p2786_p1 = scmp.lt.s32.totalorder %s57_s30, %s57_s30 }
  0x10   :  { %p2787_p2 = scmp.lt.s32.totalorder %s2785_s22, %s2781_s1 }
  0x12   :  { %p2788_p3 = por %p2787_p2, %p2786_p1 }
  0x14   :  { %p2789_p4 = pnand %p2788_p3, %p2782_p0 }
  0x16   :  { %2792 = shalt.err (!%p2789_p4)
}
  0x17   :  { %59 = dma.hbm_to_vmem [thread:$0]  %s3449_s4, 16, %s57_s30, [#allocation6]  }
  0x18   :  { %s2801_s24 = scalar_lea.vmem %s81_s21, 16  ;;  %s2805_s25 = scalar_lea.vmem %s81_s21, 32 }
  0x19   :  { %p2802_p5 = scmp.ne.s32.totalorder %s81_s21, %s2801_s24  ;;  %p2806_p6 = scmp.lt.s32.totalorder %s81_s21, %s81_s21 }
  0x1a   :  { %p2807_p7 = scmp.lt.s32.totalorder %s2805_s25, %s2801_s24 }
  0x1c   :  { %p2808_p8 = por %p2807_p7, %p2806_p6 }
  0x1e   :  { %p2809_p9 = pnand %p2808_p8, %p2802_p5 }
  0x20   :  { %2812 = shalt.err (!%p2809_p9)
}
  0x21   :  { %83 = dma.hbm_to_vmem [thread:$0]  %s3453_s8, 16, %s81_s21, [#allocation9]  }
  0x22   :  { %s3051_s27 = smov [#allocation11]   ;;  %s3052_s29 = smov [#allocation14]  }
  0x23   :  { %s101_s28 = sshll.u32 %s3051_s27, 4  ;;  %s124_s0 = sshll.u32 %s3052_s29, 4  ;;  %s102_s28 = int_to_ptr.vmem [resolvable:$true] %s101_s28  ;;  %s125_s0 = int_to_ptr.vmem [resolvable:$true] %s124_s0 }
  0x24   :  { %s2821_s20 = scalar_lea.vmem %s102_s28, 1536  ;;  %p2826_p11 = scmp.lt.s32.totalorder %s102_s28, %s102_s28 }
  0x25   :  { %p2822_p10 = scmp.ne.s32.totalorder %s102_s28, %s2821_s20  ;;  %p2827_p12 = scmp.lt.s32.totalorder %s2821_s20, %s2821_s20 }
  0x27   :  { %p2828_p13 = por %p2827_p12, %p2826_p11 }
  0x29   :  { %p2829_p0 = pnand %p2828_p13, %p2822_p10 }
  0x2b   :  { %2832 = shalt.err (!%p2829_p0)
}
  0x2c   :  { %s3053_s4 = smov 128   ;;  %s3054_s30 = smov 8  }
  0x2d   :  { %107 = dma.hbm_to_vmem [thread:$0]  %s3455_s10, 1536, %s102_s28, [#allocation12], %s3053_s4, %s3053_s4, %s3054_s30  }
  0x2e   :  { %s2841_s21 = scalar_lea.vmem %s125_s0, 16  ;;  %s2845_s22 = scalar_lea.vmem %s125_s0, 32 }
  0x2f   :  { %p2842_p1 = scmp.ne.s32.totalorder %s125_s0, %s2841_s21  ;;  %p2846_p2 = scmp.lt.s32.totalorder %s125_s0, %s125_s0 }
  0x30   :  { %p2847_p3 = scmp.lt.s32.totalorder %s2845_s22, %s2841_s21 }
  0x32   :  { %p2848_p4 = por %p2847_p3, %p2846_p2 }
  0x34   :  { %p2849_p5 = pnand %p2848_p4, %p2842_p1 }
  0x36   :  { %2852 = shalt.err (!%p2849_p5)
}
  0x37   :  { %127 = dma.hbm_to_vmem [thread:$0]  %s3457_s12, 16, %s125_s0, [#allocation15]  }
  0x38   :  { %s3055_s24 = smov [#allocation17]   ;;  %s3056_s3 = smov [#allocation2]  }
  0x39   :  { %s148_s25 = sshll.u32 %s3055_s24, 4  ;;  %s41_s26 = sshll.u32 %s3056_s3, 4  ;;  %s149_s25 = int_to_ptr.vmem [resolvable:$true] %s148_s25  ;;  %s42_s26 = int_to_ptr.vmem [resolvable:$true] %s41_s26 }
  0x3a   :  { %s2861_s27 = scalar_lea.vmem %s149_s25, 16  ;;  %s2865_s10 = scalar_lea.vmem %s149_s25, 32 }
  0x3b   :  { %p2862_p6 = scmp.ne.s32.totalorder %s149_s25, %s2861_s27  ;;  %p2866_p7 = scmp.lt.s32.totalorder %s149_s25, %s149_s25 }
  0x3c   :  { %p2867_p8 = scmp.lt.s32.totalorder %s2865_s10, %s2861_s27 }
  0x3e   :  { %p2868_p9 = por %p2867_p8, %p2866_p7 }
  0x40   :  { %p2869_p10 = pnand %p2868_p9, %p2862_p6 }
  0x42   :  { %2872 = shalt.err (!%p2869_p10)
}
  0x43   :  { %151 = dma.hbm_to_vmem [thread:$0]  %s3460_s15, 16, %s149_s25, [#allocation18]  }
  0x44   :  { %s2881_s20 = scalar_lea.vmem %s42_s26, 384  ;;  %p2886_p12 = scmp.lt.s32.totalorder %s42_s26, %s42_s26 }
  0x45   :  { %p2882_p11 = scmp.ne.s32.totalorder %s42_s26, %s2881_s20  ;;  %p2887_p13 = scmp.lt.s32.totalorder %s2881_s20, %s2881_s20 }
  0x47   :  { %p2888_p0 = por %p2887_p13, %p2886_p12 }
  0x49   :  { %p2889_p1 = pnand %p2888_p0, %p2882_p11 }
  0x4b   :  { %2892 = shalt.err (!%p2889_p1)
}
  0x4c   :  { %s3471_s1 = sld [smem:[#allocation33_spill]]  ;;  %s3057_s8 = smov [#allocation7]  }
  0x4d   :  { %s70_s21 = sshll.u32 %s3057_s8, 4  ;;  %s3058_s22 = smov [#allocation10]   ;;  %s71_s21 = int_to_ptr.vmem [resolvable:$true] %s70_s21 }
  0x4e   :  { %s89_s2 = sshll.u32 %s3058_s22, 4  ;;  %s2901_s15 = scalar_lea.vmem %s71_s21, 16  ;;  %s90_s2 = int_to_ptr.vmem [resolvable:$true] %s89_s2 }
  0x4f   :  { %p2902_p2 = scmp.ne.s32.totalorder %s71_s21, %s2901_s15  ;;  %s2905_s23 = scalar_lea.vmem %s71_s21, 32 }
  0x50   :  { %p2906_p3 = scmp.lt.s32.totalorder %s71_s21, %s71_s21  ;;  %p2907_p4 = scmp.lt.s32.totalorder %s2905_s23, %s2901_s15 }
  0x52   :  { %47 = dma.hbm_to_vmem [thread:$0]  %s3471_s1, 384, %s42_s26, [#allocation3], %s3053_s4, %s3053_s4, %s3054_s30  }
  0x53   :  { %p2908_p5 = por %p2907_p4, %p2906_p3 }
  0x55   :  { %p2909_p6 = pnand %p2908_p5, %p2902_p2 }
  0x57   :  { %2912 = shalt.err (!%p2909_p6)
}
  0x58   :  { %73 = dma.hbm_to_vmem [thread:$0]  %s3452_s7, 16, %s71_s21, [#allocation6]  }
  0x59   :  { %s2921_s3 = scalar_lea.vmem %s90_s2, 192  ;;  %p2926_p8 = scmp.lt.s32.totalorder %s90_s2, %s90_s2 }
  0x5a   :  { %p2922_p7 = scmp.ne.s32.totalorder %s90_s2, %s2921_s3  ;;  %p2927_p9 = scmp.lt.s32.totalorder %s2921_s3, %s2921_s3 }
  0x5c   :  { %p2928_p10 = por %p2927_p9, %p2926_p8 }
  0x5e   :  { %p2929_p11 = pnand %p2928_p10, %p2922_p7 }
  0x60   :  { %2932 = shalt.err (!%p2929_p11)
}
  0x61   :  { %s3059_s26 = smov 64   ;;  %s3060_s27 = smov 4  }
  0x62   :  { %95 = dma.hbm_to_vmem [thread:$0]  %s3454_s9, 192, %s90_s2, [#allocation9], %s3059_s26, %s3059_s26, %s3060_s27  }
  0x63   :  { %s3061_s29 = smov [#allocation13]   ;;  %s3062_s12 = smov [#allocation16]  }
  0x64   :  { %s114_s20 = sshll.u32 %s3061_s29, 4  ;;  %s135_s0 = sshll.u32 %s3062_s12, 4  ;;  %s115_s20 = int_to_ptr.vmem [resolvable:$true] %s114_s20  ;;  %s136_s0 = int_to_ptr.vmem [resolvable:$true] %s135_s0 }
  0x65   :  { %s2941_s7 = scalar_lea.vmem %s115_s20, 16  ;;  %s2945_s1 = scalar_lea.vmem %s115_s20, 32 }
  0x66   :  { %p2942_p12 = scmp.ne.s32.totalorder %s115_s20, %s2941_s7  ;;  %p2946_p13 = scmp.lt.s32.totalorder %s115_s20, %s115_s20 }
  0x67   :  { %p2947_p0 = scmp.lt.s32.totalorder %s2945_s1, %s2941_s7 }
  0x69   :  { %p2948_p1 = por %p2947_p0, %p2946_p13 }
  0x6b   :  { %p2949_p2 = pnand %p2948_p1, %p2942_p12 }
  0x6d   :  { %2952 = shalt.err (!%p2949_p2)
}
  0x6e   :  { %117 = dma.hbm_to_vmem [thread:$0]  %s3456_s11, 16, %s115_s20, [#allocation12]  }
  0x6f   :  { %s2961_s22 = scalar_lea.vmem %s136_s0, 1536  ;;  %p2966_p4 = scmp.lt.s32.totalorder %s136_s0, %s136_s0 }
  0x70   :  { %p2962_p3 = scmp.ne.s32.totalorder %s136_s0, %s2961_s22  ;;  %p2967_p5 = scmp.lt.s32.totalorder %s2961_s22, %s2961_s22 }
  0x72   :  { %p2968_p6 = por %p2967_p5, %p2966_p4 }
  0x74   :  { %p2969_p7 = pnand %p2968_p6, %p2962_p3 }
  0x76   :  { %2972 = shalt.err (!%p2969_p7)
}
  0x77   :  { %141 = dma.hbm_to_vmem [thread:$0]  %s3459_s14, 1536, %s136_s0, [#allocation15], %s3053_s4, %s3053_s4, %s3054_s30  }
  0x78   :  { %s3063_s15 = smov [#allocation19]   ;;  %s3064_s24 = smov [#allocation20]  }
  0x79   :  { %s158_s23 = sshll.u32 %s3063_s15, 4  ;;  %s170_s25 = sshll.u32 %s3064_s24, 4  ;;  %s159_s23 = int_to_ptr.vmem [resolvable:$true] %s158_s23  ;;  %s171_s25 = int_to_ptr.vmem [resolvable:$true] %s170_s25 }
  0x7a   :  { %s2981_s11 = scalar_lea.vmem %s159_s23, 16  ;;  %s2985_s3 = scalar_lea.vmem %s159_s23, 32 }
  0x7b   :  { %p2982_p8 = scmp.ne.s32.totalorder %s159_s23, %s2981_s11  ;;  %p2986_p9 = scmp.lt.s32.totalorder %s159_s23, %s159_s23 }
  0x7c   :  { %p2987_p10 = scmp.lt.s32.totalorder %s2985_s3, %s2981_s11 }
  0x7e   :  { %p2988_p11 = por %p2987_p10, %p2986_p9 }
  0x80   :  { %p2989_p12 = pnand %p2988_p11, %p2982_p8 }
  0x82   :  { %2992 = shalt.err (!%p2989_p12)
}
  0x83   :  { %161 = dma.hbm_to_vmem [thread:$0]  %s3461_s16, 16, %s159_s23, [#allocation18]  }
  0x84   :  { %s3001_s10 = scalar_lea.vmem %s171_s25, 16  ;;  %s3005_s14 = scalar_lea.vmem %s171_s25, 32 }
  0x85   :  { %p3002_p13 = scmp.ne.s32.totalorder %s171_s25, %s3001_s10  ;;  %p3006_p0 = scmp.lt.s32.totalorder %s171_s25, %s171_s25 }
  0x86   :  { %p3007_p1 = scmp.lt.s32.totalorder %s3005_s14, %s3001_s10 }
  0x88   :  { %p3008_p2 = por %p3007_p1, %p3006_p0 }
  0x8a   :  { %p3009_p3 = pnand %p3008_p2, %p3002_p13 }
  0x8c   :  { %3012 = shalt.err (!%p3009_p3)
}
  0x8d   :  { %173 = dma.hbm_to_vmem [thread:$0]  %s3463_s18, 16, %s171_s25, [#allocation21]  }
  0x8e   :  { %3033 = dma.done.wait [#allocation3], 384  }
  0x8f   :  { %3034 = vsyncadd [#allocation3], 4294966912 }
  0x90   :  { %3035 = dma.done.wait [#allocation6], 32  }
  0x91   :  { %3036 = vsyncadd [#allocation6], 4294967264 }
  0x92   :  { %3037 = dma.done.wait [#allocation9], 208  }
  0x93   :  { %3038 = vsyncadd [#allocation9], 4294967088 }
  0x94   :  { %3039 = dma.done.wait [#allocation12], 1552  }
  0x95   :  { %3040 = vsyncadd [#allocation12], 4294965744 }
  0x96   :  { %3041 = dma.done.wait [#allocation15], 1552  }
  0x97   :  { %3042 = vsyncadd [#allocation15], 4294965744 }
  0x98   :  { %3043 = dma.done.wait [#allocation18], 32  }
  0x99   :  { %3044 = vsyncadd [#allocation18], 4294967264 }
  0x9a   :  { %3045 = dma.done.wait [#allocation21], 16  }
  0x9b   :  { %3046 = vsyncadd [#allocation21], 4294967280  ;;  %s3472_s29 = sld [smem:[#allocation31_spill]]  ;;  %vm216_vm0 = vcmask 261120   ;;  %v384_v8 = vld [vmem:[#allocation2 + $0x8] sm:$0xff]  ;;  %v298_v9 = vld [vmem:[#allocation2] sm:$0xff] }
  0x9c   :  { %s3473_s22 = sld [smem:[#allocation32_spill]]  ;;  %vm385_vm1 = vcmask 64512   ;;  %v633_v16 = vld [vmem:[#allocation2 + $0x10] sm:$0xff]  ;;  %v3065_v21 = vmov 0.0   ;;  %vm3066_vm2 = vmmov 0   ;;  %vm769_vm3 = vcmask 130048  }
  0x9d   :  { %s3474_s4 = sld [smem:[#allocation34_spill]]  ;;  %v2397_v62 = vld [vmem:[#allocation5] ss:$0 sm:$0xff]  ;;  %vm1726_vm4 = vcmask 257024   ;;  %vm1773_vm5 = vcmask 1043456   ;;  %vm1769_vm6 = vcmask 31744  }
  0x9e   :  { %vm2231_vm7 = vcmask 254976   ;;  %vm2357_vm8 = vcmask 58368  }
  0xa1   :  { %v213_v0 = vld [vmem:[%s3472_s29 + $0x18] sm:$0xff]  ;;  %v212_v1 = vld [vmem:[%s3472_s29 + $0x10] sm:$0xff]  ;;  %v211_v2 = vld [vmem:[%s3472_s29 + $0x8] sm:$0xff] }
  0xa2   :  { %2537 = vmatprep.subr.mxu0 %v213_v0  ;;  %2548 = vmatprep.subr.mxu1 %v213_v0  ;;  %v210_v3 = vld [vmem:[%s3472_s29] sm:$0xff]  ;;  %v2382_v5 = vld [vmem:[%s3473_s22 + $0x10] sm:$0xff]  ;;  %v215_v6 = vld [vmem:[%s3473_s22 + $0x8] sm:$0xff] }
  0xa3   :  { %2538 = vmatpush3.msra.mxu0 %v213_v0  ;;  %2549 = vmatpush3.msra.mxu1 %v213_v0  ;;  %v214_v4 = vld [vmem:[%s3473_s22] sm:$0xff]  ;;  %v2383_v7 = vld [vmem:[%s3473_s22 + $0x18] sm:$0xff]  ;;  %v2391_v15 = vld [vmem:[%s3473_s22 + $0x28] sm:$0xff] }
  0xa4   :  { %2539 = vmatprep.subr.mxu0 %v212_v1  ;;  %2550 = vmatprep.subr.mxu1 %v212_v1  ;;  %v2390_v14 = vld [vmem:[%s3473_s22 + $0x20] sm:$0xff] }
  0xa5   :  { %2540 = vmatpush3.msra.mxu0 %v212_v1  ;;  %2551 = vmatpush3.msra.mxu1 %v212_v1  ;;  %v2396_v59 = vld [vmem:[%s3474_s4] ss:$0 sm:$0xff] }
  0xa6   :  { %2541 = vmatprep.subr.mxu0 %v211_v2  ;;  %2552 = vmatprep.subr.mxu1 %v211_v2 }
  0xa7   :  { %2542 = vmatpush3.msra.mxu0 %v211_v2  ;;  %2553 = vmatpush3.msra.mxu1 %v211_v2 }
  0xa8   :  { %2543 = vmatprep.subr.mxu0 %v210_v3  ;;  %2554 = vmatprep.subr.mxu1 %v210_v3 }
  0xa9   :  { %2544 = vmatpush3.msra.mxu0 %v210_v3  ;;  %2545 = vmatprep.mubr.msk.f32.mxu0 %vm216_vm0, %v214_v4 }
  0xaa   :  { %2555 = vmatpush3.msra.mxu1 %v210_v3  ;;  %2556 = vmatprep.mubr.msk.f32.mxu1 %vm216_vm0, %v2382_v5  ;;  %v768_v5 = vld [vmem:[%s3450_s5] sm:$0xff] }
  0xab   :  { %2546 = vmatmul.mubr.msk.f32.vlgmr.msra.gmra.mxu0 %vm216_vm0, %v215_v6  ;;  %2557 = vmatmul.mubr.msk.f32.vlgmr.msra.gmra.mxu1 %vm216_vm0, %v2383_v7  ;;  %v2399_v6 = vld [vmem:[%s3450_s5 + $0x8] sm:$0xff]  ;;  %v2404_v7 = vld [vmem:[%s3451_s6 + $0x38] sm:$0xff] }
  0xac   :  { %2559 = vmatprep.subr.mxu0 %v384_v8  ;;  %2564 = vmatprep.subr.mxu1 %v298_v9 }
  0xad   :  { %2560 = vmatpush3.msra.mxu0 %v384_v8  ;;  %2565 = vmatpush3.msra.mxu1 %v298_v9  ;;  %v846_v8 = vld [vmem:[%s3451_s6 + $0x18] sm:$0xff]  ;;  %v2403_v9 = vld [vmem:[%s3451_s6 + $0x30] sm:$0xff] }
  0xae   :  { %2569 = vmatprep.subr.mxu0 %v213_v0  ;;  %2580 = vmatprep.subr.mxu1 %v633_v16 }
 0x16b   :  { %v2547_v10 = vpop.f32.mrf.mxu0  ;;  %v2558_v11 = vpop.f32.mrf.mxu1 }
 0x16d   :  { %v289_v12 = vpop.f32.mrf.mxu0  ;;  %v374_v13 = vpop.f32.mrf.mxu1 }
 0x16e   :  { %2561 = vmatprep.mubr.msk.f32.mxu0 %vm385_vm1, %v374_v13  ;;  %2566 = vmatprep.mubr.msk.f32.mxu1 %vm385_vm1, %v289_v12  ;;  %v844_v12 = vld [vmem:[%s3451_s6 + $0x8] sm:$0xff]  ;;  %v2401_v13 = vld [vmem:[%s3451_s6 + $0x20] sm:$0xff] }
 0x16f   :  { %2562 = vmatmul.mubr.msk.f32.vlgmr.msra.gmra.mxu0 %vm385_vm1, %v2558_v11  ;;  %2567 = vmatmul.mubr.msk.f32.vlgmr.msra.gmra.mxu1 %vm385_vm1, %v2547_v10  ;;  %v845_v10 = vld [vmem:[%s3451_s6 + $0x10] sm:$0xff]  ;;  %v2402_v11 = vld [vmem:[%s3451_s6 + $0x28] sm:$0xff] }
 0x170   :  { %2570 = vmatpush3.msra.mxu0 %v213_v0  ;;  %2577 = vmatprep.mubr.msk.f32.mxu0 %vm216_vm0, %v2390_v14  ;;  %v843_v14 = vld [vmem:[%s3451_s6] sm:$0xff] }
 0x171   :  { %2571 = vmatprep.subr.mxu0 %v212_v1  ;;  %2581 = vmatpush3.msra.mxu1 %v633_v16 }
 0x172   :  { %2572 = vmatpush3.msra.mxu0 %v212_v1  ;;  %2585 = vmatprep.subr.mxu1 %v3065_v21 }
 0x173   :  { %2573 = vmatprep.subr.mxu0 %v211_v2 }
 0x174   :  { %2574 = vmatpush3.msra.mxu0 %v211_v2 }
 0x175   :  { %2575 = vmatprep.subr.mxu0 %v210_v3 }
 0x176   :  { %2576 = vmatpush3.msra.mxu0 %v210_v3 }
 0x177   :  { %2578 = vmatmul.mubr.msk.f32.vlgmr.msra.gmra.mxu0 %vm216_vm0, %v2391_v15  ;;  %2592 = vmatprep.subr.mxu0 %v3065_v21 }
 0x178   :  { %2596 = vmatprep.mubr.msk.f32.mxu0 %vm3066_vm2, %v3065_v21 }
 0x22f   :  { %v2563_v17 = vpop.f32.mrf.mxu0  ;;  %v2568_v22 = vpop.f32.mrf.mxu1 }
 0x230   :  { %v545_v24 = vadd.f32 %v2568_v22, %v2563_v17  ;;  %v2412_v17 = vld [vmem:[%s3451_s6 + $0x58] sm:$0xff]  ;;  %v2411_v22 = vld [vmem:[%s3451_s6 + $0x50] sm:$0xff] }
 0x231   :  { %v458_v18 = vpop.f32.mrf.mxu0  ;;  %v539_v23 = vpop.f32.mrf.mxu1 }
 0x232   :  { %v540_v26 = vadd.f32 %v539_v23, %v458_v18  ;;  %v2410_v23 = vld [vmem:[%s3451_s6 + $0x48] sm:$0xff] }
 0x237   :  { %v2579_v19 = vpop.f32.mrf.mxu0 }
 0x239   :  { %v623_v20 = vpop.f32.mrf.mxu0 }
 0x23a   :  { %2582 = vmatprep.mubr.msk.f32.mxu1 %vm385_vm1, %v623_v20 }
 0x23b   :  { %2583 = vmatmul.mubr.msk.f32.vlgmr.msra.gmra.mxu1 %vm385_vm1, %v2579_v19  ;;  %v2407_v19 = vld [vmem:[%s3450_s5 + $0x10] sm:$0xff] }
 0x23c   :  { %2589 = vmatprep.mubr.msk.f32.mxu1 %vm3066_vm2, %v3065_v21 }
 0x2fb   :  { %v2584_v25 = vpop.f32.mrf.mxu1 }
 0x2fc   :  { %v716_v27 = vadd.f32 %v2584_v25, %v545_v24  ;;  %v2409_v24 = vld [vmem:[%s3451_s6 + $0x40] sm:$0xff] }
 0x2fd   :  { %v706_v28 = vpop.f32.mrf.mxu1 }
 0x2fe   :  { %v728_v29 = vmul.f32 %v716_v27, %v716_v27  ;;  %v715_v30 = vadd.f32 %v706_v28, %v540_v26  ;;  %v718_v31 = vsel %vm216_vm0, %v716_v27, 0.0 }
 0x300   :  { %v717_v32 = vsel %vm216_vm0, %v715_v30, 0.0  ;;  %v727_v33 = vmul.f32 %v715_v30, %v715_v30  ;;  %v730_v35 = vsel %vm216_vm0, %v728_v29, 0.0 }
 0x301   :  { %v719_v34 = vadd.f32 %v718_v31, %v717_v32  ;;  %v1425_v32 = vld [vmem:[#allocation11 + $0x38] sm:$0xff] }
 0x302   :  { %v729_v36 = vsel %vm216_vm0, %v727_v33, 0.0  ;;  %v1424_v33 = vld [vmem:[#allocation11 + $0x30] sm:$0xff] }
 0x303   :  { %v720_v37 = vrot.slane %v719_v34, 4  ;;  %v731_v38 = vadd.f32 %v730_v35, %v729_v36 }
 0x305   :  { %v721_v39 = vadd.f32 %v720_v37, %v719_v34  ;;  %v732_v40 = vrot.slane %v731_v38, 4 }
 0x307   :  { %v722_v41 = vrot.slane %v721_v39, 2  ;;  %v733_v42 = vadd.f32 %v732_v40, %v731_v38 }
 0x309   :  { %v723_v43 = vadd.f32 %v722_v41, %v721_v39  ;;  %v734_v44 = vrot.slane %v733_v42, 2 }
 0x30b   :  { %v724_v45 = vrot.slane %v723_v43, 1  ;;  %v735_v46 = vadd.f32 %v734_v44, %v733_v42 }
 0x30d   :  { %v725_v47 = vadd.f32 %v724_v45, %v723_v43  ;;  %v736_v48 = vrot.slane %v735_v46, 1 }
 0x30f   :  { %v726_v49 = vmul.f32 0.0625, %v725_v47  ;;  %v737_v50 = vadd.f32 %v736_v48, %v735_v46 }
 0x311   :  { %v738_v51 = vmul.f32 0.0625, %v737_v50  ;;  %v739_v52 = vmul.f32 %v726_v49, %v726_v49  ;;  %v742_v53 = vsub.f32 %v715_v30, %v726_v49  ;;  %v743_v54 = vsub.f32 %v716_v27, %v726_v49 }
 0x313   :  { %v740_v55 = vsub.f32 %v738_v51, %v739_v52 }
 0x315   :  { %v741_v56 = vmax.f32 %v740_v55, 0.0 }
 0x317   :  { %v744_v57 = vadd.f32 1e-05, %v741_v56 }
 0x319   :  { %2765 = vrsqrt.f32 %v744_v57 }
 0x326   :  { %v2766_v58 = vpop.eup %2765 }
 0x327   :  { %v746_v60 = vmul.f32 %v2766_v58, %v742_v53  ;;  %v747_v61 = vmul.f32 %v2766_v58, %v743_v54 }
 0x329   :  { %v755_v63 = vmul.f32 %v2396_v59, %v746_v60  ;;  %v756_v0 = vmul.f32 %v2396_v59, %v747_v61  ;;  %v2414_v60 = vld [vmem:[#allocation7] ss:$0 sm:$0xff] }
 0x32b   :  { %v765_v1 = vadd.f32 %v2397_v62, %v756_v0  ;;  %v764_v2 = vadd.f32 %v2397_v62, %v755_v63  ;;  %v2415_v62 = vld [vmem:[#allocation8] ss:$0 sm:$0xff] }
 0x32d   :  { %v767_v3 = vmax.f32 %v765_v1, 0.0  ;;  %v766_v4 = vmax.f32 %v764_v2, 0.0  ;;  %v1268_v2 = vld [vmem:[#allocation10] sm:$0xf] }
 0x32f   :  { %2586 = vmatpush3.msra.mxu1 %v767_v3  ;;  %2593 = vmatpush3.msra.mxu0 %v767_v3 }
 0x330   :  { %2587 = vmatprep.subr.mxu1 %v3065_v21  ;;  %2594 = vmatprep.subr.mxu0 %v3065_v21 }
 0x331   :  { %2588 = vmatpush3.msra.mxu1 %v766_v4  ;;  %2595 = vmatpush3.msra.mxu0 %v766_v4 }
 0x332   :  { %2590 = vmatmul.mubr.msk.f32.vlgmr.msra.gmra.mxu1 %vm769_vm3, %v768_v5  ;;  %2597 = vmatmul.mubr.msk.f32.vlgmr.msra.gmra.mxu0 %vm769_vm3, %v2399_v6  ;;  %v1344_v5 = vld [vmem:[#allocation11 + $0x10] sm:$0xff]  ;;  %v1343_v6 = vld [vmem:[#allocation11 + $0x8] sm:$0xff] }
 0x333   :  { %2599 = vmatprep.subr.mxu1 %v3065_v21  ;;  %2610 = vmatprep.subr.mxu0 %v3065_v21 }
 0x334   :  { %2600 = vmatpush3.msra.mxu1 %v2404_v7  ;;  %2611 = vmatpush3.msra.mxu0 %v846_v8  ;;  %v1342_v7 = vld [vmem:[#allocation11] sm:$0xff]  ;;  %v1423_v8 = vld [vmem:[#allocation11 + $0x28] sm:$0xff] }
 0x335   :  { %2601 = vmatprep.subr.mxu1 %v3065_v21  ;;  %2612 = vmatprep.subr.mxu0 %v3065_v21 }
 0x336   :  { %2602 = vmatpush3.msra.mxu1 %v2403_v9  ;;  %2613 = vmatpush3.msra.mxu0 %v845_v10  ;;  %v1422_v9 = vld [vmem:[#allocation11 + $0x20] sm:$0xff] }
 0x337   :  { %2603 = vmatprep.subr.mxu1 %v3065_v21  ;;  %2614 = vmatprep.subr.mxu0 %v3065_v21 }
 0x338   :  { %2604 = vmatpush3.msra.mxu1 %v2402_v11  ;;  %2615 = vmatpush3.msra.mxu0 %v844_v12 }
 0x339   :  { %2605 = vmatprep.subr.mxu1 %v3065_v21  ;;  %2616 = vmatprep.subr.mxu0 %v3065_v21 }
 0x33a   :  { %2606 = vmatpush3.msra.mxu1 %v2401_v13  ;;  %2607 = vmatprep.mubr.msk.f32.mxu1 %vm3066_vm2, %v3065_v21 }
 0x33b   :  { %2618 = vmatprep.mubr.msk.f32.mxu0 %vm3066_vm2, %v3065_v21  ;;  %2621 = vmatprep.subr.mxu1 %v3065_v21 }
 0x33c   :  { %2617 = vmatpush3.msra.mxu0 %v843_v14  ;;  %v1573_v14 = vld [vmem:[#allocation10 + $0x8] sm:$0xf] }
 0x33d   :  { %2628 = vmatprep.subr.mxu0 %v3065_v21 }
 0x3f2   :  { %v839_v15 = vpop.f32.mrf.mxu1  ;;  %v918_v16 = vpop.f32.mrf.mxu0 }
 0x3f3   :  { %2608 = vmatmul.mubr.msk.f32.vlgmr.msra.gmra.mxu1 %vm216_vm0, %v918_v16  ;;  %2619 = vmatmul.mubr.msk.f32.vlgmr.msra.gmra.mxu0 %vm216_vm0, %v839_v15  ;;  %v1651_v15 = vld [vmem:[#allocation11 + $0x58] sm:$0xff]  ;;  %v1650_v16 = vld [vmem:[#allocation11 + $0x50] sm:$0xff] }
 0x3f4   :  { %2622 = vmatpush3.msra.mxu1 %v767_v3  ;;  %v2598_v18 = vpop.f32.mrf.mxu0  ;;  %2625 = vmatprep.mubr.msk.f32.mxu1 %vm3066_vm2, %v3065_v21  ;;  %v2591_v20 = vpop.f32.mrf.mxu1  ;;  %v1347_v3 = vld [vmem:[#allocation10 + $0x4] sm:$0xf] }
 0x3f5   :  { %2623 = vmatprep.subr.mxu1 %v3065_v21  ;;  %2629 = vmatpush3.msra.mxu0 %v2412_v17  ;;  %v1649_v17 = vld [vmem:[#allocation11 + $0x48] sm:$0xff]  ;;  %v1648_v18 = vld [vmem:[#allocation11 + $0x40] sm:$0xff] }
 0x3f6   :  { %2624 = vmatpush3.msra.mxu1 %v766_v4  ;;  %2630 = vmatprep.subr.mxu0 %v3065_v21  ;;  %v1345_v4 = vld [vmem:[#allocation11 + $0x18] sm:$0xff] }
 0x3f7   :  { %2626 = vmatmul.mubr.msk.f32.vlgmr.msra.gmra.mxu1 %vm769_vm3, %v2407_v19  ;;  %2636 = vmatprep.mubr.msk.f32.mxu0 %vm3066_vm2, %v3065_v21 }
 0x3f8   :  { %2639 = vmatprep.subr.mxu1 %v3065_v21  ;;  %2641 = vmatprep.mubr.msk.f32.mxu1 %vm3066_vm2, %v3065_v21 }
 0x3f9   :  { %2631 = vmatpush3.msra.mxu0 %v2411_v22 }
 0x3fa   :  { %2632 = vmatprep.subr.mxu0 %v3065_v21 }
 0x3fb   :  { %2633 = vmatpush3.msra.mxu0 %v2410_v23 }
 0x3fc   :  { %2634 = vmatprep.subr.mxu0 %v3065_v21 }
 0x3fd   :  { %2635 = vmatpush3.msra.mxu0 %v2409_v24 }
 0x3fe   :  { %2649 = vmatprep.subr.mxu0 %v3065_v21 }
 0x4b3   :  { %v996_v25 = vpop.f32.mrf.mxu1  ;;  %v1069_v26 = vpop.f32.mrf.mxu0 }
 0x4b4   :  { %v1070_v27 = vadd.f32 %v1069_v26, %v996_v25 }
 0x4b5   :  { %v2609_v28 = vpop.f32.mrf.mxu1  ;;  %v2620_v29 = vpop.f32.mrf.mxu0 }
 0x4b6   :  { %v1929_v28 = vld [vmem:[#allocation16 + $0x30] sm:$0xff] }
 0x4b7   :  { %v1144_v30 = vpop.f32.mrf.mxu1 }
 0x4b8   :  { %2637 = vmatmul.mubr.msk.f32.vlgmr.msra.gmra.mxu0 %vm216_vm0, %v1144_v30 }
 0x4b9   :  { %v2627_v31 = vpop.f32.mrf.mxu1  ;;  %2657 = vmatprep.mubr.msk.f32.mxu0 %vm3066_vm2, %v3065_v21  ;;  %2650 = vmatpush3.msra.mxu0 %v1425_v32 }
 0x4ba   :  { %2651 = vmatprep.subr.mxu0 %v3065_v21 }
 0x4bb   :  { %2652 = vmatpush3.msra.mxu0 %v1424_v33 }
 0x4bc   :  { %2653 = vmatprep.subr.mxu0 %v3065_v21 }
 0x4bd   :  { %2654 = vmatpush3.msra.mxu0 %v1423_v8 }
 0x4be   :  { %2655 = vmatprep.subr.mxu0 %v3065_v21 }
 0x4bf   :  { %2656 = vmatpush3.msra.mxu0 %v1422_v9  ;;  %v2431_v9 = vld [vmem:[%s3458_s13 + $0x4] sm:$0x3] }
 0x4c0   :  { %2671 = vmatprep.subr.mxu0 %v3065_v21 }
 0x578   :  { %v1222_v34 = vpop.f32.mrf.mxu0 }
 0x579   :  { %v1226_v35 = vadd.f32 %v1222_v34, %v1070_v27  ;;  %v1930_v27 = vld [vmem:[#allocation16 + $0x38] sm:$0xff] }
 0x57a   :  { %v2638_v36 = vpop.f32.mrf.mxu0 }
 0x57b   :  { %v1227_v37 = vsel %vm216_vm0, %v1226_v35, 0.0  ;;  %v1235_v38 = vmul.f32 %v1226_v35, %v1226_v35 }
 0x57c   :  { %v1228_v39 = vrot.slane %v1227_v37, 4 }
 0x57d   :  { %v1236_v40 = vsel %vm216_vm0, %v1235_v38, 0.0 }
 0x57e   :  { %v1229_v41 = vadd.f32 %v1228_v39, %v1227_v37  ;;  %v1237_v42 = vrot.slane %v1236_v40, 4 }
 0x580   :  { %v1230_v43 = vrot.slane %v1229_v41, 2  ;;  %v1238_v44 = vadd.f32 %v1237_v42, %v1236_v40 }
 0x582   :  { %v1231_v45 = vadd.f32 %v1230_v43, %v1229_v41  ;;  %v1239_v46 = vrot.slane %v1238_v44, 2 }
 0x584   :  { %v1232_v47 = vrot.slane %v1231_v45, 1  ;;  %v1240_v48 = vadd.f32 %v1239_v46, %v1238_v44 }
 0x586   :  { %v1233_v49 = vadd.f32 %v1232_v47, %v1231_v45  ;;  %v1241_v50 = vrot.slane %v1240_v48, 1 }
 0x588   :  { %v1234_v51 = vmul.f32 0.125, %v1233_v49  ;;  %v1242_v52 = vadd.f32 %v1241_v50, %v1240_v48 }
 0x58a   :  { %v1243_v53 = vmul.f32 0.125, %v1242_v52  ;;  %v1244_v54 = vmul.f32 %v1234_v51, %v1234_v51  ;;  %v1247_v58 = vsub.f32 %v1226_v35, %v1234_v51 }
 0x58c   :  { %v1245_v55 = vsub.f32 %v1243_v53, %v1244_v54 }
 0x58e   :  { %v1246_v56 = vmax.f32 %v1245_v55, 0.0  ;;  %v2422_v55 = vld [vmem:[#allocation13] ss:$0 sm:$0xff] }
 0x590   :  { %v1248_v57 = vadd.f32 1e-05, %v1246_v56 }
 0x592   :  { %2767 = vrsqrt.f32 %v1248_v57  ;;  %v2423_v57 = vld [vmem:[#allocation14] ss:$0 sm:$0xff] }
 0x59f   :  { %v2768_v59 = vpop.eup %2767 }
 0x5a0   :  { %v1250_v61 = vmul.f32 %v2768_v59, %v1247_v58 }
 0x5a2   :  { %v1258_v63 = vmul.f32 %v2414_v60, %v1250_v61  ;;  %v1768_v61 = vld [vmem:[%s3458_s13] sm:$0x3] }
 0x5a4   :  { %v1266_v0 = vadd.f32 %v2415_v62, %v1258_v63  ;;  %v2426_v62 = vld [vmem:[%s3458_s13 + $0x2] sm:$0x3]  ;;  %v1850_v63 = vld [vmem:[#allocation16 + $0x18] sm:$0xff] }
 0x5a6   :  { %v1267_v1 = vmax.f32 %v1266_v0, 0.0  ;;  %v1849_v0 = vld [vmem:[#allocation16 + $0x10] sm:$0xff] }
 0x5a8   :  { %2640 = vmatpush3.msra.mxu1 %v1267_v1 }
 0x5a9   :  { %2642 = vmatmul.mubr.msk.f32.vlgmr.msra.gmra.mxu1 %vm385_vm1, %v1268_v2  ;;  %2644 = vmatprep.subr.mxu1 %v3065_v21  ;;  %v1928_v2 = vld [vmem:[#allocation16 + $0x28] sm:$0xff] }
 0x5aa   :  { %2645 = vmatpush3.msra.mxu1 %v1267_v1  ;;  %2646 = vmatprep.mubr.msk.f32.mxu1 %vm3066_vm2, %v3065_v21 }
 0x5ab   :  { %2660 = vmatprep.subr.mxu1 %v3065_v21 }
 0x5ad   :  { %2647 = vmatmul.mubr.msk.f32.vlgmr.msra.gmra.mxu1 %vm385_vm1, %v1347_v3  ;;  %v1847_v3 = vld [vmem:[#allocation16] sm:$0xff] }
 0x5ae   :  { %2661 = vmatpush3.msra.mxu1 %v1345_v4  ;;  %2668 = vmatprep.mubr.msk.f32.mxu1 %vm3066_vm2, %v3065_v21  ;;  %v1927_v4 = vld [vmem:[#allocation16 + $0x20] sm:$0xff] }
 0x5af   :  { %2662 = vmatprep.subr.mxu1 %v3065_v21 }
 0x5b0   :  { %2663 = vmatpush3.msra.mxu1 %v1344_v5 }
 0x5b1   :  { %2664 = vmatprep.subr.mxu1 %v3065_v21 }
 0x5b2   :  { %2665 = vmatpush3.msra.mxu1 %v1343_v6 }
 0x5b3   :  { %2666 = vmatprep.subr.mxu1 %v3065_v21 }
 0x5b4   :  { %2667 = vmatpush3.msra.mxu1 %v1342_v7 }
 0x5b5   :  { %2676 = vmatprep.subr.mxu1 %v3065_v21 }
 0x669   :  { %v1338_v10 = vpop.f32.mrf.mxu1 }
 0x66a   :  { %2669 = vmatmul.mubr.msk.f32.vlgmr.msra.gmra.mxu1 %vm216_vm0, %v1338_v10  ;;  %v2156_v10 = vld [vmem:[#allocation16 + $0x58] sm:$0xff] }
 0x66b   :  { %v2643_v11 = vpop.f32.mrf.mxu1  ;;  %2684 = vmatprep.mubr.msk.f32.mxu1 %vm3066_vm2, %v3065_v21  ;;  %2677 = vmatpush3.msra.mxu1 %v1651_v15 }
 0x66c   :  { %2678 = vmatprep.subr.mxu1 %v3065_v21  ;;  %v2155_v11 = vld [vmem:[#allocation16 + $0x50] sm:$0xff] }
 0x66d   :  { %v1417_v12 = vpop.f32.mrf.mxu1  ;;  %2679 = vmatpush3.msra.mxu1 %v1650_v16 }
 0x66e   :  { %2658 = vmatmul.mubr.msk.f32.vlgmr.msra.gmra.mxu0 %vm216_vm0, %v1417_v12  ;;  %2680 = vmatprep.subr.mxu1 %v3065_v21  ;;  %v2154_v12 = vld [vmem:[#allocation16 + $0x48] sm:$0xff] }
 0x66f   :  { %2672 = vmatpush3.msra.mxu0 %v1267_v1  ;;  %v2648_v13 = vpop.f32.mrf.mxu1  ;;  %2673 = vmatprep.mubr.msk.f32.mxu0 %vm3066_vm2, %v3065_v21  ;;  %v1848_v1 = vld [vmem:[#allocation16 + $0x8] sm:$0xff] }
 0x670   :  { %2687 = vmatprep.subr.mxu0 %v3065_v21  ;;  %2681 = vmatpush3.msra.mxu1 %v1649_v17  ;;  %v2153_v13 = vld [vmem:[#allocation16 + $0x40] sm:$0xff] }
 0x671   :  { %2682 = vmatprep.subr.mxu1 %v3065_v21 }
 0x672   :  { %2674 = vmatmul.mubr.msk.f32.vlgmr.msra.gmra.mxu0 %vm385_vm1, %v1573_v14  ;;  %2683 = vmatpush3.msra.mxu1 %v1648_v18 }
 0x673   :  { %2689 = vmatprep.mubr.msk.f32.mxu0 %vm3066_vm2, %v3065_v21  ;;  %2697 = vmatprep.subr.mxu1 %v3065_v21 }
 0x72a   :  { %v1568_v19 = vpop.f32.mrf.mxu1 }
 0x72c   :  { %v2670_v20 = vpop.f32.mrf.mxu1 }
 0x72e   :  { %v1495_v22 = vpop.f32.mrf.mxu0 }
 0x72f   :  { %v1569_v23 = vadd.f32 %v1568_v19, %v1495_v22  ;;  %v2276_v22 = vld [vmem:[%s3462_s17 + $0x18] sm:$0xff] }
 0x730   :  { %v2659_v24 = vpop.f32.mrf.mxu0 }
 0x731   :  { %v2274_v24 = vld [vmem:[%s3462_s17 + $0x8] sm:$0xff] }
 0x732   :  { %v1643_v25 = vpop.f32.mrf.mxu0 }
 0x733   :  { %2685 = vmatmul.mubr.msk.f32.vlgmr.msra.gmra.mxu1 %vm216_vm0, %v1643_v25  ;;  %v2273_v25 = vld [vmem:[%s3462_s17] sm:$0xff] }
 0x734   :  { %v2675_v26 = vpop.f32.mrf.mxu0  ;;  %2705 = vmatprep.mubr.msk.f32.mxu1 %vm3066_vm2, %v3065_v21  ;;  %2698 = vmatpush3.msra.mxu1 %v1930_v27 }
 0x735   :  { %2699 = vmatprep.subr.mxu1 %v3065_v21 }
 0x736   :  { %2700 = vmatpush3.msra.mxu1 %v1929_v28 }
 0x737   :  { %2701 = vmatprep.subr.mxu1 %v3065_v21 }
 0x738   :  { %2702 = vmatpush3.msra.mxu1 %v1928_v2 }
 0x739   :  { %2703 = vmatprep.subr.mxu1 %v3065_v21 }
 0x73a   :  { %2704 = vmatpush3.msra.mxu1 %v1927_v4 }
 0x73b   :  { %2719 = vmatprep.subr.mxu1 %v3065_v21 }
 0x7f3   :  { %v1721_v29 = vpop.f32.mrf.mxu1 }
 0x7f4   :  { %v1725_v30 = vadd.f32 %v1721_v29, %v1569_v23  ;;  %v2275_v23 = vld [vmem:[%s3462_s17 + $0x10] sm:$0xff]  ;;  %s3067_s17 = smov [#allocation22]  }
 0x7f5   :  { %v2686_v31 = vpop.f32.mrf.mxu1  ;;  %s2365_s15 = sshll.u32 %s3067_s17, 4  ;;  %s2366_s15 = int_to_ptr.vmem [resolvable:$true] %s2365_s15 }
 0x7f6   :  { %v1727_v32 = vsel %vm1726_vm4, %v1725_v30, 0.0  ;;  %v1735_v33 = vmul.f32 %v1725_v30, %v1725_v30  ;;  %s3013_s23 = scalar_lea.vmem %s2366_s15, 32  ;;  %p3018_p5 = scmp.lt.s32.totalorder %s2366_s15, %s2366_s15 }
 0x7f7   :  { %v1728_v34 = vrot.slane %v1727_v32, 4  ;;  %p3014_p4 = scmp.ne.s32.totalorder %s2366_s15, %s3013_s23  ;;  %p3019_p6 = scmp.lt.s32.totalorder %s3013_s23, %s3013_s23 }
 0x7f8   :  { %v1736_v35 = vsel %vm1726_vm4, %v1735_v33, 0.0 }
 0x7f9   :  { %v1729_v36 = vadd.f32 %v1728_v34, %v1727_v32  ;;  %v1737_v37 = vrot.slane %v1736_v35, 4  ;;  %p3020_p7 = por %p3019_p6, %p3018_p5 }
 0x7fb   :  { %v1730_v38 = vrot.slane %v1729_v36, 2  ;;  %v1738_v39 = vadd.f32 %v1737_v37, %v1736_v35  ;;  %p3021_p8 = pnand %p3020_p7, %p3014_p4 }
 0x7fd   :  { %v1731_v40 = vadd.f32 %v1730_v38, %v1729_v36  ;;  %v1739_v41 = vrot.slane %v1738_v39, 2 }
 0x7ff   :  { %v1732_v42 = vrot.slane %v1731_v40, 1  ;;  %v1740_v43 = vadd.f32 %v1739_v41, %v1738_v39 }
 0x801   :  { %v1733_v44 = vadd.f32 %v1732_v42, %v1731_v40  ;;  %v1741_v45 = vrot.slane %v1740_v43, 1 }
 0x803   :  { %v1734_v46 = vmul.f32 0.25, %v1733_v44  ;;  %v1742_v47 = vadd.f32 %v1741_v45, %v1740_v43 }
 0x805   :  { %v1743_v48 = vmul.f32 0.25, %v1742_v47  ;;  %v1744_v49 = vmul.f32 %v1734_v46, %v1734_v46  ;;  %v1747_v53 = vsub.f32 %v1725_v30, %v1734_v46 }
 0x807   :  { %v1745_v50 = vsub.f32 %v1743_v48, %v1744_v49 }
 0x809   :  { %v1746_v51 = vmax.f32 %v1745_v50, 0.0 }
 0x80b   :  { %v1748_v52 = vadd.f32 1e-05, %v1746_v51  ;;  %v2435_v51 = vld [vmem:[#allocation17] ss:$0 sm:$0xff] }
 0x80d   :  { %2769 = vrsqrt.f32 %v1748_v52 }
 0x81a   :  { %v2770_v54 = vpop.eup %2769 }
 0x81b   :  { %v1750_v56 = vmul.f32 %v2770_v54, %v1747_v53  ;;  %v2436_v53 = vld [vmem:[#allocation19] ss:$0 sm:$0xff] }
 0x81d   :  { %v1758_v58 = vmul.f32 %v2422_v55, %v1750_v56 }
 0x81f   :  { %v1766_v59 = vadd.f32 %v2423_v57, %v1758_v58  ;;  %v2437_v57 = vld [vmem:[#allocation20] ss:$0 sm:$0xff] }
 0x821   :  { %v1767_v60 = vmax.f32 %v1766_v59, 0.0 }
 0x823   :  { %2688 = vmatpush3.msk.msra.mxu0 %vm1773_vm5, %v1767_v60 }
 0x824   :  { %2690 = vmatmul.mubr.msk.f32.vlgmr.msra.gmra.mxu0 %vm1769_vm6, %v1768_v61  ;;  %2692 = vmatprep.subr.mxu0 %v3065_v21 }
 0x825   :  { %2693 = vmatpush3.msk.msra.mxu0 %vm1773_vm5, %v1767_v60  ;;  %2694 = vmatprep.mubr.msk.f32.mxu0 %vm3066_vm2, %v3065_v21 }
 0x826   :  { %2708 = vmatprep.subr.mxu0 %v3065_v21 }
 0x828   :  { %2695 = vmatmul.mubr.msk.f32.vlgmr.msra.gmra.mxu0 %vm1769_vm6, %v2426_v62 }
 0x829   :  { %2709 = vmatpush3.msra.mxu0 %v1850_v63  ;;  %2716 = vmatprep.mubr.msk.f32.mxu0 %vm3066_vm2, %v3065_v21 }
 0x82a   :  { %2710 = vmatprep.subr.mxu0 %v3065_v21 }
 0x82b   :  { %2711 = vmatpush3.msra.mxu0 %v1849_v0 }
 0x82c   :  { %2712 = vmatprep.subr.mxu0 %v3065_v21 }
 0x82d   :  { %2713 = vmatpush3.msra.mxu0 %v1848_v1 }
 0x82e   :  { %2714 = vmatprep.subr.mxu0 %v3065_v21 }
 0x82f   :  { %2715 = vmatpush3.msra.mxu0 %v1847_v3 }
 0x830   :  { %2724 = vmatprep.subr.mxu0 %v3065_v21 }
 0x8e4   :  { %v1843_v5 = vpop.f32.mrf.mxu0 }
 0x8e5   :  { %2717 = vmatmul.mubr.msk.f32.vlgmr.msra.gmra.mxu0 %vm216_vm0, %v1843_v5 }
 0x8e6   :  { %v2691_v6 = vpop.f32.mrf.mxu0  ;;  %2732 = vmatprep.mubr.msk.f32.mxu0 %vm3066_vm2, %v3065_v21  ;;  %2725 = vmatpush3.msra.mxu0 %v2156_v10 }
 0x8e7   :  { %2726 = vmatprep.subr.mxu0 %v3065_v21 }
 0x8e8   :  { %v1922_v7 = vpop.f32.mrf.mxu0  ;;  %2727 = vmatpush3.msra.mxu0 %v2155_v11 }
 0x8e9   :  { %2706 = vmatmul.mubr.msk.f32.vlgmr.msra.gmra.mxu1 %vm216_vm0, %v1922_v7  ;;  %2728 = vmatprep.subr.mxu0 %v3065_v21 }
 0x8ea   :  { %2720 = vmatpush3.msk.msra.mxu1 %vm1773_vm5, %v1767_v60  ;;  %v2696_v8 = vpop.f32.mrf.mxu0  ;;  %2721 = vmatprep.mubr.msk.f32.mxu1 %vm3066_vm2, %v3065_v21 }
 0x8eb   :  { %2735 = vmatprep.subr.mxu1 %v3065_v21  ;;  %2729 = vmatpush3.msra.mxu0 %v2154_v12 }
 0x8ec   :  { %2730 = vmatprep.subr.mxu0 %v3065_v21 }
 0x8ed   :  { %2722 = vmatmul.mubr.msk.f32.vlgmr.msra.gmra.mxu1 %vm1769_vm6, %v2431_v9  ;;  %2731 = vmatpush3.msra.mxu0 %v2153_v13 }
 0x8ee   :  { %2743 = vmatprep.mubr.msk.f32.mxu1 %vm3066_vm2, %v3065_v21  ;;  %2736 = vmatpush3.msra.mxu1 %v2276_v22 }
 0x8ef   :  { %2737 = vmatprep.subr.mxu1 %v3065_v21 }
 0x8f0   :  { %2738 = vmatpush3.msra.mxu1 %v2275_v23 }
 0x8f1   :  { %2739 = vmatprep.subr.mxu1 %v3065_v21 }
 0x8f2   :  { %2740 = vmatpush3.msra.mxu1 %v2274_v24 }
 0x8f3   :  { %2741 = vmatprep.subr.mxu1 %v3065_v21 }
 0x8f4   :  { %2742 = vmatpush3.msra.mxu1 %v2273_v25 }
 0x9a5   :  { %v2073_v14 = vpop.f32.mrf.mxu0 }
 0x9a7   :  { %v2718_v15 = vpop.f32.mrf.mxu0 }
 0x9a9   :  { %v2000_v16 = vpop.f32.mrf.mxu1 }
 0x9aa   :  { %v2074_v17 = vadd.f32 %v2073_v14, %v2000_v16 }
 0x9ab   :  { %v2707_v18 = vpop.f32.mrf.mxu1 }
 0x9ad   :  { %v2148_v19 = vpop.f32.mrf.mxu1 }
 0x9ae   :  { %2733 = vmatmul.mubr.msk.f32.vlgmr.msra.gmra.mxu0 %vm216_vm0, %v2148_v19 }
 0x9af   :  { %v2723_v20 = vpop.f32.mrf.mxu1 }
 0xa6e   :  { %v2226_v26 = vpop.f32.mrf.mxu0 }
 0xa6f   :  { %v2230_v27 = vadd.f32 %v2226_v26, %v2074_v17 }
 0xa70   :  { %v2734_v28 = vpop.f32.mrf.mxu0 }
 0xa71   :  { %v2232_v29 = vsel %vm2231_vm7, %v2230_v27, 0.0  ;;  %v2240_v30 = vmul.f32 %v2230_v27, %v2230_v27 }
 0xa72   :  { %v2233_v31 = vrot.slane %v2232_v29, 4 }
 0xa73   :  { %v2241_v32 = vsel %vm2231_vm7, %v2240_v30, 0.0 }
 0xa74   :  { %v2234_v33 = vadd.f32 %v2233_v31, %v2232_v29  ;;  %v2242_v34 = vrot.slane %v2241_v32, 4 }
 0xa76   :  { %v2235_v35 = vrot.slane %v2234_v33, 2  ;;  %v2243_v36 = vadd.f32 %v2242_v34, %v2241_v32 }
 0xa78   :  { %v2236_v37 = vadd.f32 %v2235_v35, %v2234_v33  ;;  %v2244_v38 = vrot.slane %v2243_v36, 2 }
 0xa7a   :  { %v2237_v39 = vrot.slane %v2236_v37, 1  ;;  %v2245_v40 = vadd.f32 %v2244_v38, %v2243_v36 }
 0xa7c   :  { %v2238_v41 = vadd.f32 %v2237_v39, %v2236_v37  ;;  %v2246_v42 = vrot.slane %v2245_v40, 1 }
 0xa7e   :  { %v2239_v21 = vmul.f32 0.5, %v2238_v41  ;;  %v2247_v43 = vadd.f32 %v2246_v42, %v2245_v40 }
 0xa80   :  { %v2248_v44 = vmul.f32 0.5, %v2247_v43  ;;  %v2249_v45 = vmul.f32 %v2239_v21, %v2239_v21  ;;  %v2252_v49 = vsub.f32 %v2230_v27, %v2239_v21 }
 0xa82   :  { %v2250_v46 = vsub.f32 %v2248_v44, %v2249_v45 }
 0xa84   :  { %v2251_v47 = vmax.f32 %v2250_v46, 0.0 }
 0xa86   :  { %v2253_v48 = vadd.f32 1e-05, %v2251_v47 }
 0xa88   :  { %2771 = vrsqrt.f32 %v2253_v48 }
 0xa95   :  { %v2772_v50 = vpop.eup %2771 }
 0xa96   :  { %v2255_v52 = vmul.f32 %v2772_v50, %v2252_v49 }
 0xa98   :  { %v2263_v54 = vmul.f32 %v2435_v51, %v2255_v52 }
 0xa9a   :  { %v2271_v55 = vadd.f32 %v2436_v53, %v2263_v54 }
 0xa9c   :  { %v2272_v56 = vmax.f32 %v2271_v55, 0.0 }
 0xa9e   :  { %2744 = vmatmul.mubr.msk.f32.vlgmr.msra.gmra.mxu1 %vm216_vm0, %v2272_v56 }
 0xb5e   :  { %v2353_v58 = vpop.f32.mrf.mxu1 }
 0xb5f   :  { %v2354_v59 = vadd.f32 %v2437_v57, %v2353_v58 }
 0xb60   :  { %v2745_v60 = vpop.f32.mrf.mxu1 }
 0xb61   :  { %2358 = vst.msk [vmem:[#allocation22] sm:$0x3] %vm2357_vm8, %v2354_v59 }
 0xb62   :  { %3024 = shalt.err (!%p3021_p8)
}
 0xb63   :  { %2368 = dma.vmem_to_hbm [thread:$0]  %s2366_s15, 32, %s3464_s19, [#allocation4]  }
 0xb64   :  { %3047 = dma.done.wait [#allocation4], 32  }
 0xb65   :  { %3048 = vsyncadd [#allocation4], 4294967264 }
 0xb66   :  { %2372 = vsyncpa [#allocation3], 1 }
 0xb67   :  { %2373 = vsyncpa [#allocation6], 1 }
 0xb68   :  { %2374 = vsyncpa [#allocation9], 1 }
 0xb69   :  { %2375 = vsyncpa [#allocation12], 1 }
 0xb6a   :  { %2376 = vsyncpa [#allocation15], 1 }
 0xb6b   :  { %2377 = vsyncpa [#allocation18], 1 }
 0xb6c   :  { %2378 = vsyncpa [#allocation21], 1 }
 0xb6d   :  { %2379 = vsyncpa [#allocation4], 1 }

</bundles_post_ra>
